<compile_context>
chip_gen: v5e
topology: v5e:2x2
jax: 0.10.0
libtpu: 0.0.40
codegen_flags: <defaults>
</compile_context>

<pallas_src>
import jax
import jax.numpy as jnp
from jax.experimental import pallas as pl
from jax.experimental.pallas import tpu as pltpu


def _round_up(a, b):
    return (a + b - 1) // b * b


# ---------------------------------------------------------------------------
# Kernel: whole 5-layer MLP on one (tn, Cin) row tile.
# ---------------------------------------------------------------------------
def _mlp_kernel(x_ref,
                w0_ref, b0_ref,
                w1_ref, b1_ref,
                w2_ref, b2_ref,
                w3_ref, b3_ref,
                wf_ref, bf_ref,
                o_ref):
    cd = w0_ref.dtype  # MXU operand dtype (bf16 by default); accumulate in f32.

    # hidden layer 0: [tn, 63] @ [63, 128] + [1, 128], ReLU  (f32 epilogue)
    h = jnp.dot(x_ref[...].astype(cd), w0_ref[...],
                preferred_element_type=jnp.float32)
    h = jnp.maximum(h + b0_ref[...], 0.0)

    # hidden layers 1..3: [tn, 128] @ [128, 128] + bias, ReLU
    for w_ref, b_ref in ((w1_ref, b1_ref), (w2_ref, b2_ref), (w3_ref, b3_ref)):
        h = jnp.dot(h.astype(cd), w_ref[...],
                    preferred_element_type=jnp.float32)
        h = jnp.maximum(h + b_ref[...], 0.0)

    # final layer (no ReLU): [tn, 128] @ [128, 8] + bias
    out = jnp.dot(h.astype(cd), wf_ref[...],
                  preferred_element_type=jnp.float32) + bf_ref[...]
    o_ref[...] = out.astype(o_ref.dtype)


# ---------------------------------------------------------------------------
# Wrapper
# ---------------------------------------------------------------------------
_WEIGHT_KEYS = ("w0", "w1", "w2", "w3", "wf")
_BIAS_KEYS = ("b0", "b1", "b2", "b3", "bf")


def prepare_params(params, compute_dtype=jnp.bfloat16):
    """One-time weight prep: cast weights to the MXU operand dtype, keep biases
    f32.  Call once and reuse the result if the MLP is invoked many times."""
    cd = jnp.dtype(compute_dtype)
    out = dict(params)
    for k in _WEIGHT_KEYS:
        out[k] = params[k].astype(cd)
    for k in _BIAS_KEYS:
        out[k] = params[k].astype(jnp.float32)
    return out


def _choose_tile(N, tile_n, *, min_steps=8, min_tile=128):
    """Row tile: multiple of 16 (bf16 sublane packing), big enough to amortize
    grid-step overhead, but capped so large N keeps >= min_steps grid steps
    (both v7x TCs fed, pipeline stays deep)."""
    tn = _round_up(max(int(tile_n), 16), 16)
    tn = min(tn, _round_up(N, 16))                       # never exceed the batch
    if N >= min_steps * min_tile:
        cap = max(_round_up(-(-N // min_steps), 16), min_tile)
        tn = min(tn, cap)
    return max(tn, 16)


def _estimate_vmem_bytes(tn, x_itemsize, out_itemsize, params_bytes):
    lane = 128
    x_buf = 2 * tn * lane * x_itemsize      # x tile, double-buffered, 63->128 lanes
    o_buf = 2 * tn * lane * out_itemsize    # out tile, double-buffered, 8->128 lanes
    act = 4 * tn * 128 * 4                  # a few live f32 activation tiles
    wts = 2 * params_bytes                  # VMEM-resident weights/biases (x2 buf)
    return x_buf + o_buf + act + wts


def xyz_mlp_pallas(x, params, *, tile_n=2048, compute_dtype=jnp.bfloat16,
                   vmem_limit_bytes=None):
    """x: [N, in_channels_xyz].  params: dict of weights stored TRANSPOSED
    ([fan_in, fan_out]) and biases [1, fan_out] (see init_params / prepare_params).

    compute_dtype is the MXU operand dtype (default bf16: 2-3x fewer MXU passes
    on v5e/v6e/v7x); accumulation and the bias+ReLU epilogue are always f32.
    Pass x already in bf16 to also halve the dominant input DMA.
    """
    N, Cin = x.shape
    Cout = params["wf"].shape[1]
    cd = jnp.dtype(compute_dtype)

    # Hoisted prep: only convert if not already prepared in this dtype.
    if params["w0"].dtype != cd:
        params = prepare_params(params, cd)

    tn = _choose_tile(N, tile_n)
    grid = (pl.cdiv(N, tn),)                 # ragged final block, masked on store

    # Constant-index full blocks: weights/biases DMA'd once, VMEM resident.
    def const_spec(arr):
        return pl.BlockSpec(arr.shape, lambda i: (0, 0))

    in_specs = [pl.BlockSpec((tn, Cin), lambda i: (i, 0))]   # x row tile (full Cin)
    const_args = []
    for wk, bk in zip(_WEIGHT_KEYS, _BIAS_KEYS):
        w, b = params[wk], params[bk]
        in_specs += [const_spec(w), const_spec(b)]
        const_args += [w, b]

    out_spec = pl.BlockSpec((tn, Cout), lambda i: (i, 0))

    if vmem_limit_bytes is None:
        params_bytes = sum(int(a.size) * a.dtype.itemsize for a in const_args)
        est = _estimate_vmem_bytes(tn, x.dtype.itemsize,
                                   jnp.dtype(x.dtype).itemsize, params_bytes)
        vmem_limit_bytes = min(max(int(1.5 * est), 16 * 1024 * 1024),
                               40 * 1024 * 1024)

    return pl.pallas_call(
        _mlp_kernel,
        out_shape=jax.ShapeDtypeStruct((N, Cout), x.dtype),
        grid_spec=pltpu.PrefetchScalarGridSpec(
            num_scalar_prefetch=0,
            grid=grid,
            in_specs=in_specs,
            out_specs=out_spec,
        ),
        compiler_params=pltpu.CompilerParams(
            dimension_semantics=("parallel",),   # megacore-shardable on v7x
            vmem_limit_bytes=vmem_limit_bytes,
        ),
    )(x, *const_args)


# ---------------------------------------------------------------------------
# Parameter init (mimics nn.Linear) and a pure-JAX reference.
# ---------------------------------------------------------------------------
def init_params(key, D=4, W=128, in_channels_xyz=63, out_channels_xyz=8,
                dtype=jnp.float32):
    """Weights stored TRANSPOSED relative to torch: [fan_in, fan_out].
    Biases stored as [1, fan_out] for 2-D TPU layout."""
    params = {}
    keys = jax.random.split(key, 2 * (D + 1))
    k_idx = 0

    def linear(fan_in, fan_out):
        nonlocal k_idx
        bound = 1.0 / jnp.sqrt(jnp.asarray(fan_in, dtype=jnp.float32))
        w = jax.random.uniform(keys[k_idx], (fan_in, fan_out), dtype,
                               minval=-bound, maxval=bound)
        b = jax.random.uniform(keys[k_idx + 1], (1, fan_out), dtype,
                               minval=-bound, maxval=bound)
        k_idx += 2
        return w, b

    params["w0"], params["b0"] = linear(in_channels_xyz, W)
    for i in range(1, D):
        params[f"w{i}"], params[f"b{i}"] = linear(W, W)
    params["wf"], params["bf"] = linear(W, out_channels_xyz)
    return params


def xyz_mlp_reference(x, params, D=4):
    h = x
    for i in range(D):
        h = jnp.maximum(h @ params[f"w{i}"] + params[f"b{i}"], 0.0)
    return h @ params["wf"] + params["bf"]


if __name__ == "__main__":
    key = jax.random.PRNGKey(0)
    k_param, k_x = jax.random.split(key)

    D, W, Cin, Cout = 4, 128, 63, 8
    N = 300  # small batch, not a multiple of any tile -> exercises ragged block

    params = init_params(k_param, D=D, W=W,
                         in_channels_xyz=Cin, out_channels_xyz=Cout)
    x = jax.random.normal(k_x, (N, Cin), dtype=jnp.float32)

    ref = xyz_mlp_reference(x, params, D=D)

    # f32 MXU path, single grid step (tight check vs reference).
    out_f32 = jax.block_until_ready(
        xyz_mlp_pallas(x, params, compute_dtype=jnp.float32))
    assert out_f32.shape == (N, Cout)
    assert jnp.allclose(out_f32, ref, atol=1e-4, rtol=1e-4), "f32 mismatch"

    # Default bf16 path with pre-prepared params, small tile -> multi-step grid
    # with a ragged final block (masked store).
    params_bf16 = prepare_params(params, jnp.bfloat16)
    out_bf16 = jax.block_until_ready(
        xyz_mlp_pallas(x, params_bf16, tile_n=128))
    assert out_bf16.shape == (N, Cout)
    assert jnp.allclose(out_bf16, ref, atol=5e-2, rtol=5e-2), "bf16 mismatch"

    print("KERNEL_OK")
</pallas_src>

<mosaic_0001>
module attributes {stable_mosaic.version = 11 : i64} {
  func.func @_mlp_kernel(%arg0: i32, %arg1: memref<304x63xf32, #tpu.memory_space<vmem>>, %arg2: memref<63x128xf32, #tpu.memory_space<vmem>>, %arg3: memref<1x128xf32, #tpu.memory_space<vmem>>, %arg4: memref<128x128xf32, #tpu.memory_space<vmem>>, %arg5: memref<1x128xf32, #tpu.memory_space<vmem>>, %arg6: memref<128x128xf32, #tpu.memory_space<vmem>>, %arg7: memref<1x128xf32, #tpu.memory_space<vmem>>, %arg8: memref<128x128xf32, #tpu.memory_space<vmem>>, %arg9: memref<1x128xf32, #tpu.memory_space<vmem>>, %arg10: memref<128x8xf32, #tpu.memory_space<vmem>>, %arg11: memref<1x8xf32, #tpu.memory_space<vmem>>, %arg12: memref<304x8xf32, #tpu.memory_space<vmem>>) attributes {dimension_semantics = [#tpu.dimension_semantics<parallel>], iteration_bounds = array<i64: 1>, scalar_prefetch = 0 : i64, scratch_operands = 0 : i64, tpu.core_type = #tpu.core_type<tc>, window_params = [{transform_indices = @transform_0, window_bounds = array<i64: 304, 63>}, {pipeline_mode = #tpu.pipeline_mode<synchronous>, transform_indices = @transform_1, window_bounds = array<i64: 63, 128>}, {pipeline_mode = #tpu.pipeline_mode<synchronous>, transform_indices = @transform_2, window_bounds = array<i64: 1, 128>}, {pipeline_mode = #tpu.pipeline_mode<synchronous>, transform_indices = @transform_3, window_bounds = array<i64: 128, 128>}, {pipeline_mode = #tpu.pipeline_mode<synchronous>, transform_indices = @transform_4, window_bounds = array<i64: 1, 128>}, {pipeline_mode = #tpu.pipeline_mode<synchronous>, transform_indices = @transform_5, window_bounds = array<i64: 128, 128>}, {pipeline_mode = #tpu.pipeline_mode<synchronous>, transform_indices = @transform_6, window_bounds = array<i64: 1, 128>}, {pipeline_mode = #tpu.pipeline_mode<synchronous>, transform_indices = @transform_7, window_bounds = array<i64: 128, 128>}, {pipeline_mode = #tpu.pipeline_mode<synchronous>, transform_indices = @transform_8, window_bounds = array<i64: 1, 128>}, {pipeline_mode = #tpu.pipeline_mode<synchronous>, transform_indices = @transform_9, window_bounds = array<i64: 128, 8>}, {pipeline_mode = #tpu.pipeline_mode<synchronous>, transform_indices = @transform_10, window_bounds = array<i64: 1, 8>}, {transform_indices = @transform_11, window_bounds = array<i64: 304, 8>}]} {
    %c0 = arith.constant 0 : index
    %c0_0 = arith.constant 0 : index
    %0 = vector.load %arg1[%c0, %c0_0] : memref<304x63xf32, #tpu.memory_space<vmem>>, vector<304x63xf32>
    %c0_1 = arith.constant 0 : index
    %c0_2 = arith.constant 0 : index
    %1 = vector.load %arg2[%c0_1, %c0_2] : memref<63x128xf32, #tpu.memory_space<vmem>>, vector<63x128xf32>
    %cst = arith.constant dense<0.000000e+00> : vector<304x128xf32>
    %2 = tpu.matmul %0, %1, %cst {dimension_numbers = #tpu.dot_dimension_numbers<[1], [0], [0], [1], [0, 0, 1, 1], [], []>} : vector<304x63xf32>, vector<63x128xf32>, vector<304x128xf32> -> vector<304x128xf32>
    %c0_3 = arith.constant 0 : index
    %c0_4 = arith.constant 0 : index
    %3 = vector.load %arg3[%c0_3, %c0_4] : memref<1x128xf32, #tpu.memory_space<vmem>>, vector<1x128xf32>
    %4 = vector.broadcast %3 : vector<1x128xf32> to vector<304x128xf32>
    %5 = arith.addf %2, %4 : vector<304x128xf32>
    %cst_5 = arith.constant 0.000000e+00 : f32
    %6 = vector.broadcast %cst_5 : f32 to vector<304x128xf32>
    %7 = arith.maximumf %5, %6 : vector<304x128xf32>
    %c0_6 = arith.constant 0 : index
    %c0_7 = arith.constant 0 : index
    %8 = vector.load %arg4[%c0_6, %c0_7] : memref<128x128xf32, #tpu.memory_space<vmem>>, vector<128x128xf32>
    %cst_8 = arith.constant dense<0.000000e+00> : vector<304x128xf32>
    %9 = tpu.matmul %7, %8, %cst_8 {dimension_numbers = #tpu.dot_dimension_numbers<[1], [0], [0], [1], [0, 0, 1, 1], [], []>} : vector<304x128xf32>, vector<128x128xf32>, vector<304x128xf32> -> vector<304x128xf32>
    %c0_9 = arith.constant 0 : index
    %c0_10 = arith.constant 0 : index
    %10 = vector.load %arg5[%c0_9, %c0_10] : memref<1x128xf32, #tpu.memory_space<vmem>>, vector<1x128xf32>
    %11 = vector.broadcast %10 : vector<1x128xf32> to vector<304x128xf32>
    %12 = arith.addf %9, %11 : vector<304x128xf32>
    %cst_11 = arith.constant 0.000000e+00 : f32
    %13 = vector.broadcast %cst_11 : f32 to vector<304x128xf32>
    %14 = arith.maximumf %12, %13 : vector<304x128xf32>
    %c0_12 = arith.constant 0 : index
    %c0_13 = arith.constant 0 : index
    %15 = vector.load %arg6[%c0_12, %c0_13] : memref<128x128xf32, #tpu.memory_space<vmem>>, vector<128x128xf32>
    %cst_14 = arith.constant dense<0.000000e+00> : vector<304x128xf32>
    %16 = tpu.matmul %14, %15, %cst_14 {dimension_numbers = #tpu.dot_dimension_numbers<[1], [0], [0], [1], [0, 0, 1, 1], [], []>} : vector<304x128xf32>, vector<128x128xf32>, vector<304x128xf32> -> vector<304x128xf32>
    %c0_15 = arith.constant 0 : index
    %c0_16 = arith.constant 0 : index
    %17 = vector.load %arg7[%c0_15, %c0_16] : memref<1x128xf32, #tpu.memory_space<vmem>>, vector<1x128xf32>
    %18 = vector.broadcast %17 : vector<1x128xf32> to vector<304x128xf32>
    %19 = arith.addf %16, %18 : vector<304x128xf32>
    %cst_17 = arith.constant 0.000000e+00 : f32
    %20 = vector.broadcast %cst_17 : f32 to vector<304x128xf32>
    %21 = arith.maximumf %19, %20 : vector<304x128xf32>
    %c0_18 = arith.constant 0 : index
    %c0_19 = arith.constant 0 : index
    %22 = vector.load %arg8[%c0_18, %c0_19] : memref<128x128xf32, #tpu.memory_space<vmem>>, vector<128x128xf32>
    %cst_20 = arith.constant dense<0.000000e+00> : vector<304x128xf32>
    %23 = tpu.matmul %21, %22, %cst_20 {dimension_numbers = #tpu.dot_dimension_numbers<[1], [0], [0], [1], [0, 0, 1, 1], [], []>} : vector<304x128xf32>, vector<128x128xf32>, vector<304x128xf32> -> vector<304x128xf32>
    %c0_21 = arith.constant 0 : index
    %c0_22 = arith.constant 0 : index
    %24 = vector.load %arg9[%c0_21, %c0_22] : memref<1x128xf32, #tpu.memory_space<vmem>>, vector<1x128xf32>
    %25 = vector.broadcast %24 : vector<1x128xf32> to vector<304x128xf32>
    %26 = arith.addf %23, %25 : vector<304x128xf32>
    %cst_23 = arith.constant 0.000000e+00 : f32
    %27 = vector.broadcast %cst_23 : f32 to vector<304x128xf32>
    %28 = arith.maximumf %26, %27 : vector<304x128xf32>
    %c0_24 = arith.constant 0 : index
    %c0_25 = arith.constant 0 : index
    %29 = vector.load %arg10[%c0_24, %c0_25] : memref<128x8xf32, #tpu.memory_space<vmem>>, vector<128x8xf32>
    %cst_26 = arith.constant dense<0.000000e+00> : vector<304x8xf32>
    %30 = tpu.matmul %28, %29, %cst_26 {dimension_numbers = #tpu.dot_dimension_numbers<[1], [0], [0], [1], [0, 0, 1, 1], [], []>} : vector<304x128xf32>, vector<128x8xf32>, vector<304x8xf32> -> vector<304x8xf32>
    %c0_27 = arith.constant 0 : index
    %c0_28 = arith.constant 0 : index
    %31 = vector.load %arg11[%c0_27, %c0_28] : memref<1x8xf32, #tpu.memory_space<vmem>>, vector<1x8xf32>
    %32 = vector.broadcast %31 : vector<1x8xf32> to vector<304x8xf32>
    %33 = arith.addf %30, %32 : vector<304x8xf32>
    %c0_29 = arith.constant 0 : index
    %c0_30 = arith.constant 0 : index
    %34 = vector.load %arg12[%c0_29, %c0_30] : memref<304x8xf32, #tpu.memory_space<vmem>>, vector<304x8xf32>
    tpu.vector_store %arg12[%c0_29, %c0_30], %33 {strides = array<i32>} : memref<304x8xf32, #tpu.memory_space<vmem>>, vector<304x8xf32>,
    return
  }
  func.func @transform_0(%arg0: i32) -> (i32, i32) {
    %c0_i32 = arith.constant 0 : i32
    %c0_i32_0 = arith.constant 0 : i32
    return %arg0, %c0_i32 : i32, i32
  }
  func.func @transform_1(%arg0: i32) -> (i32, i32) {
    %c0_i32 = arith.constant 0 : i32
    %c0_i32_0 = arith.constant 0 : i32
    %c0_i32_1 = arith.constant 0 : i32
    return %c0_i32, %c0_i32_0 : i32, i32
  }
  func.func @transform_2(%arg0: i32) -> (i32, i32) {
    %c0_i32 = arith.constant 0 : i32
    %c0_i32_0 = arith.constant 0 : i32
    %c0_i32_1 = arith.constant 0 : i32
    return %c0_i32, %c0_i32_0 : i32, i32
  }
  func.func @transform_3(%arg0: i32) -> (i32, i32) {
    %c0_i32 = arith.constant 0 : i32
    %c0_i32_0 = arith.constant 0 : i32
    %c0_i32_1 = arith.constant 0 : i32
    return %c0_i32, %c0_i32_0 : i32, i32
  }
  func.func @transform_4(%arg0: i32) -> (i32, i32) {
    %c0_i32 = arith.constant 0 : i32
    %c0_i32_0 = arith.constant 0 : i32
    %c0_i32_1 = arith.constant 0 : i32
    return %c0_i32, %c0_i32_0 : i32, i32
  }
  func.func @transform_5(%arg0: i32) -> (i32, i32) {
    %c0_i32 = arith.constant 0 : i32
    %c0_i32_0 = arith.constant 0 : i32
    %c0_i32_1 = arith.constant 0 : i32
    return %c0_i32, %c0_i32_0 : i32, i32
  }
  func.func @transform_6(%arg0: i32) -> (i32, i32) {
    %c0_i32 = arith.constant 0 : i32
    %c0_i32_0 = arith.constant 0 : i32
    %c0_i32_1 = arith.constant 0 : i32
    return %c0_i32, %c0_i32_0 : i32, i32
  }
  func.func @transform_7(%arg0: i32) -> (i32, i32) {
    %c0_i32 = arith.constant 0 : i32
    %c0_i32_0 = arith.constant 0 : i32
    %c0_i32_1 = arith.constant 0 : i32
    return %c0_i32, %c0_i32_0 : i32, i32
  }
  func.func @transform_8(%arg0: i32) -> (i32, i32) {
    %c0_i32 = arith.constant 0 : i32
    %c0_i32_0 = arith.constant 0 : i32
    %c0_i32_1 = arith.constant 0 : i32
    return %c0_i32, %c0_i32_0 : i32, i32
  }
  func.func @transform_9(%arg0: i32) -> (i32, i32) {
    %c0_i32 = arith.constant 0 : i32
    %c0_i32_0 = arith.constant 0 : i32
    %c0_i32_1 = arith.constant 0 : i32
    return %c0_i32, %c0_i32_0 : i32, i32
  }
  func.func @transform_10(%arg0: i32) -> (i32, i32) {
    %c0_i32 = arith.constant 0 : i32
    %c0_i32_0 = arith.constant 0 : i32
    %c0_i32_1 = arith.constant 0 : i32
    return %c0_i32, %c0_i32_0 : i32, i32
  }
  func.func @transform_11(%arg0: i32) -> (i32, i32) {
    %c0_i32 = arith.constant 0 : i32
    %c0_i32_0 = arith.constant 0 : i32
    return %arg0, %c0_i32 : i32, i32
  }
}

</mosaic_0001>

<bundles_post_ra>
// kernel: tpu_custom_call.1
= control target key start
LH: loop header
LB: loop body
LE: loop exit
PB: predicated region body
PF: predicated region fallthrough
CT: control target
= control target key end

     0   :  { %vm203_vm0 = vcmask 1046528   ;;  %vm88_vm1 = vcmask 515072   ;;  %vm1094_vm2 = vcmask 64512   ;;  %s2025_s1 = inlined_call_operand.vmem [shape: f32[63,128], index: 1, kind: input, shape index: {}]   ;;  %s2026_s2 = inlined_call_operand.vmem [shape: f32[1,128], index: 2, kind: input, shape index: {}]   ;;  %s2027_s0 = inlined_call_operand.vmem [shape: f32[300,63], index: 0, kind: input, shape index: {}]   ;;  %s2028_s3 = inlined_call_operand.vmem [shape: f32[128,128], index: 3, kind: input, shape index: {}]   ;;  %s2029_s4 = inlined_call_operand.vmem [shape: f32[1,128], index: 4, kind: input, shape index: {}]   ;;  %s2030_s5 = inlined_call_operand.vmem [shape: f32[128,128], index: 5, kind: input, shape index: {}]   ;;  %s2031_s6 = inlined_call_operand.vmem [shape: f32[1,128], index: 6, kind: input, shape index: {}]   ;;  %s2032_s7 = inlined_call_operand.vmem [shape: f32[128,128], index: 7, kind: input, shape index: {}]   ;;  %s2033_s8 = inlined_call_operand.vmem [shape: f32[1,128], index: 8, kind: input, shape index: {}]   ;;  %s2034_s9 = inlined_call_operand.vmem [shape: f32[128,8], index: 9, kind: input, shape index: {}]   ;;  %s2035_s10 = inlined_call_operand.vmem [shape: f32[1,8], index: 10, kind: input, shape index: {}]   ;;  %s2036_s11 = inlined_call_operand.vmem [shape: f32[300,8], index: 11, kind: output, shape index: {}]  }
   0x1   :  { %v83_v0 = vld [vmem:[%s2025_s1 + $0x38] sm:$0x7f]  ;;  %v82_v1 = vld [vmem:[%s2025_s1 + $0x30] sm:$0xff]  ;;  %v81_v2 = vld [vmem:[%s2025_s1 + $0x28] sm:$0xff] }
   0x2   :  { %1137 = vmatpush.msk.msra.mxu0 %vm203_vm0, %v83_v0  ;;  %1176 = vmatpush.msk.msra.mxu1 %vm203_vm0, %v83_v0  ;;  %v80_v3 = vld [vmem:[%s2025_s1 + $0x20] sm:$0xff]  ;;  %v79_v4 = vld [vmem:[%s2025_s1 + $0x18] sm:$0xff]  ;;  %v78_v5 = vld [vmem:[%s2025_s1 + $0x10] sm:$0xff] }
   0x3   :  { %1177 = vmatpush.msk.msra.mxu2 %vm203_vm0, %v83_v0  ;;  %1178 = vmatpush.msk.msra.mxu3 %vm203_vm0, %v83_v0  ;;  %v77_v6 = vld [vmem:[%s2025_s1 + $0x8] sm:$0xff]  ;;  %v76_v7 = vld [vmem:[%s2025_s1] sm:$0xff]  ;;  %v40_v10 = vld [vmem:[%s2027_s0 + $0x10] sm:$0xff] }
   0x4   :  { %216 = vmatpush.msra.mxu0 %v82_v1  ;;  %1179 = vmatpush.msra.mxu1 %v82_v1  ;;  %v38_v8 = vld [vmem:[%s2027_s0] sm:$0xff]  ;;  %v39_v9 = vld [vmem:[%s2027_s0 + $0x8] sm:$0xff]  ;;  %v49_v11 = vld [vmem:[%s2027_s0 + $0x58] sm:$0xff] }
   0x5   :  { %1180 = vmatpush.msra.mxu2 %v82_v1  ;;  %1181 = vmatpush.msra.mxu3 %v82_v1  ;;  %v391_v12 = vld [vmem:[%s2028_s3 + $0x78] sm:$0xff]  ;;  %v390_v13 = vld [vmem:[%s2028_s3 + $0x70] sm:$0xff]  ;;  %v50_v15 = vld [vmem:[%s2027_s0 + $0x60] sm:$0xff] }
   0x6   :  { %217 = vmatpush.msra.mxu0 %v81_v2  ;;  %1182 = vmatpush.msra.mxu1 %v81_v2  ;;  %v41_v14 = vld [vmem:[%s2027_s0 + $0x18] sm:$0xff]  ;;  %v389_v16 = vld [vmem:[%s2028_s3 + $0x68] sm:$0xff]  ;;  %v42_v17 = vld [vmem:[%s2027_s0 + $0x20] sm:$0xff] }
   0x7   :  { %1183 = vmatpush.msra.mxu2 %v81_v2  ;;  %1184 = vmatpush.msra.mxu3 %v81_v2  ;;  %v388_v18 = vld [vmem:[%s2028_s3 + $0x60] sm:$0xff]  ;;  %v51_v19 = vld [vmem:[%s2027_s0 + $0x68] sm:$0xff]  ;;  %v387_v20 = vld [vmem:[%s2028_s3 + $0x58] sm:$0xff] }
   0x8   :  { %218 = vmatpush.msra.mxu0 %v80_v3  ;;  %1185 = vmatpush.msra.mxu1 %v80_v3  ;;  %v43_v21 = vld [vmem:[%s2027_s0 + $0x28] sm:$0xff]  ;;  %v52_v22 = vld [vmem:[%s2027_s0 + $0x70] sm:$0xff]  ;;  %v53_v26 = vld [vmem:[%s2027_s0 + $0x78] sm:$0xff] }
   0x9   :  { %1186 = vmatpush.msra.mxu2 %v80_v3  ;;  %1187 = vmatpush.msra.mxu3 %v80_v3  ;;  %v386_v23 = vld [vmem:[%s2028_s3 + $0x50] sm:$0xff]  ;;  %v385_v25 = vld [vmem:[%s2028_s3 + $0x48] sm:$0xff]  ;;  %v384_v27 = vld [vmem:[%s2028_s3 + $0x40] sm:$0xff] }
   0xa   :  { %219 = vmatpush.msra.mxu0 %v79_v4  ;;  %1188 = vmatpush.msra.mxu1 %v79_v4  ;;  %v44_v24 = vld [vmem:[%s2027_s0 + $0x30] sm:$0xff]  ;;  %v383_v28 = vld [vmem:[%s2028_s3 + $0x38] sm:$0xff]  ;;  %v381_v31 = vld [vmem:[%s2028_s3 + $0x28] sm:$0xff] }
   0xb   :  { %1189 = vmatpush.msra.mxu2 %v79_v4  ;;  %1190 = vmatpush.msra.mxu3 %v79_v4  ;;  %v382_v29 = vld [vmem:[%s2028_s3 + $0x30] sm:$0xff]  ;;  %v45_v30 = vld [vmem:[%s2027_s0 + $0x38] sm:$0xff]  ;;  %v54_v32 = vld [vmem:[%s2027_s0 + $0x80] sm:$0xff] }
   0xc   :  { %220 = vmatpush.msra.mxu0 %v78_v5  ;;  %1191 = vmatpush.msra.mxu1 %v78_v5  ;;  %v380_v33 = vld [vmem:[%s2028_s3 + $0x20] sm:$0xff]  ;;  %v379_v34 = vld [vmem:[%s2028_s3 + $0x18] sm:$0xff]  ;;  %v378_v35 = vld [vmem:[%s2028_s3 + $0x10] sm:$0xff] }
   0xd   :  { %1192 = vmatpush.msra.mxu2 %v78_v5  ;;  %1193 = vmatpush.msra.mxu3 %v78_v5  ;;  %v46_v36 = vld [vmem:[%s2027_s0 + $0x40] sm:$0xff]  ;;  %v377_v37 = vld [vmem:[%s2028_s3 + $0x8] sm:$0xff]  ;;  %v56_v40 = vld [vmem:[%s2027_s0 + $0x90] sm:$0xff] }
   0xe   :  { %221 = vmatpush.msra.mxu0 %v77_v6  ;;  %1194 = vmatpush.msra.mxu1 %v77_v6  ;;  %v55_v38 = vld [vmem:[%s2027_s0 + $0x88] sm:$0xff]  ;;  %v48_v41 = vld [vmem:[%s2027_s0 + $0x50] sm:$0xff]  ;;  %v57_v42 = vld [vmem:[%s2027_s0 + $0x98] sm:$0xff] }
   0xf   :  { %1195 = vmatpush.msra.mxu2 %v77_v6  ;;  %1196 = vmatpush.msra.mxu3 %v77_v6  ;;  %v47_v39 = vld [vmem:[%s2027_s0 + $0x48] sm:$0xff]  ;;  %v58_v43 = vld [vmem:[%s2027_s0 + $0xa0] sm:$0xff]  ;;  %v60_v52 = vld [vmem:[%s2027_s0 + $0xb0] sm:$0xff] }
  0x10   :  { %222 = vmatpush.msra.mxu0 %v76_v7  ;;  %1197 = vmatpush.msra.mxu1 %v76_v7  ;;  %v376_v44 = vld [vmem:[%s2028_s3] sm:$0xff]  ;;  %v59_v48 = vld [vmem:[%s2027_s0 + $0xa8] sm:$0xff]  ;;  %v61_v56 = vld [vmem:[%s2027_s0 + $0xb8] sm:$0xff] }
  0x11   :  { %1138 = vmatmul.msk.f32.vlgmr.msra.gmra.mxu0 %vm88_vm1, %v38_v8  ;;  %1198 = vmatpush.msra.mxu2 %v76_v7  ;;  %v1440_v45 = vld [vmem:[%s2026_s2] ss:$0 sm:$0xff]  ;;  %v580_v58 = vld [vmem:[%s2030_s5 + $0x78] sm:$0xff]  ;;  %v579_v61 = vld [vmem:[%s2030_s5 + $0x70] sm:$0xff] }
  0x12   :  { %1199 = vmatpush.msra.mxu3 %v76_v7  ;;  %1149 = vmatmul.msk.f32.vlgmr.msra.gmra.mxu1 %vm88_vm1, %v49_v11  ;;  %v62_v62 = vld [vmem:[%s2027_s0 + $0xc0] sm:$0xff]  ;;  %v578_v3 = vld [vmem:[%s2030_s5 + $0x68] sm:$0xff]  ;;  %v64_v11 = vld [vmem:[%s2027_s0 + $0xd0] sm:$0xff] }
  0x13   :  { %396 = vmatpush.msrb.mxu1 %v391_v12  ;;  %1159 = vmatmul.msk.f32.vlgmr.msra.gmra.mxu2 %vm88_vm1, %v59_v48  ;;  %v63_v4 = vld [vmem:[%s2027_s0 + $0xc8] sm:$0xff]  ;;  %v577_v6 = vld [vmem:[%s2030_s5 + $0x60] sm:$0xff] }
  0x14   :  { %585 = vmatpush.msrb.mxu2 %v580_v58 }
  0x15   :  { %397 = vmatpush.msrb.mxu1 %v390_v13 }
  0x16   :  { %586 = vmatpush.msrb.mxu2 %v579_v61 }
  0x17   :  { %398 = vmatpush.msrb.mxu1 %v389_v16  ;;  %v65_v16 = vld [vmem:[%s2027_s0 + $0xd8] sm:$0xff] }
  0x18   :  { %587 = vmatpush.msrb.mxu2 %v578_v3  ;;  %v74_v3 = vld [vmem:[%s2027_s0 + $0x120] sm:$0xff] }
  0x19   :  { %1139 = vmatmul.msk.f32.gmra.mxu0 %vm88_vm1, %v39_v9  ;;  %399 = vmatpush.msrb.mxu1 %v388_v18 }
  0x1a   :  { %1150 = vmatmul.msk.f32.gmra.mxu1 %vm88_vm1, %v50_v15  ;;  %588 = vmatpush.msrb.mxu2 %v577_v6  ;;  %v575_v15 = vld [vmem:[%s2030_s5 + $0x50] sm:$0xff] }
  0x1b   :  { %400 = vmatpush.msrb.mxu1 %v387_v20  ;;  %1160 = vmatmul.msk.f32.gmra.mxu2 %vm88_vm1, %v60_v52  ;;  %v573_v20 = vld [vmem:[%s2030_s5 + $0x40] sm:$0xff] }
  0x1d   :  { %401 = vmatpush.msrb.mxu1 %v386_v23 }
  0x1f   :  { %402 = vmatpush.msrb.mxu1 %v385_v25 }
  0x21   :  { %1140 = vmatmul.msk.f32.gmra.mxu0 %vm88_vm1, %v40_v10  ;;  %403 = vmatpush.msrb.mxu1 %v384_v27  ;;  %v576_v10 = vld [vmem:[%s2030_s5 + $0x58] sm:$0xff]  ;;  %v571_v27 = vld [vmem:[%s2030_s5 + $0x30] sm:$0xff] }
  0x22   :  { %1151 = vmatmul.msk.f32.gmra.mxu1 %vm88_vm1, %v51_v19  ;;  %589 = vmatpush.msrb.mxu2 %v576_v10  ;;  %v574_v19 = vld [vmem:[%s2030_s5 + $0x48] sm:$0xff] }
  0x23   :  { %404 = vmatpush.msrb.mxu1 %v383_v28  ;;  %1161 = vmatmul.msk.f32.gmra.mxu2 %vm88_vm1, %v61_v56  ;;  %v565_v56 = vld [vmem:[%s2030_s5] sm:$0xff] }
  0x24   :  { %590 = vmatpush.msrb.mxu2 %v575_v15 }
  0x25   :  { %405 = vmatpush.msrb.mxu1 %v382_v29  ;;  %v67_v29 = vld [vmem:[%s2027_s0 + $0xe8] sm:$0xff] }
  0x26   :  { %591 = vmatpush.msrb.mxu2 %v574_v19 }
  0x27   :  { %406 = vmatpush.msrb.mxu1 %v381_v31 }
  0x28   :  { %592 = vmatpush.msrb.mxu2 %v573_v20 }
  0x29   :  { %1141 = vmatmul.msk.f32.gmra.mxu0 %vm88_vm1, %v41_v14  ;;  %407 = vmatpush.msrb.mxu1 %v380_v33 }
  0x2a   :  { %1152 = vmatmul.msk.f32.gmra.mxu1 %vm88_vm1, %v52_v22  ;;  %v66_v22 = vld [vmem:[%s2027_s0 + $0xe0] sm:$0xff] }
  0x2b   :  { %408 = vmatpush.msrb.mxu1 %v379_v34  ;;  %1162 = vmatmul.msk.f32.gmra.mxu2 %vm88_vm1, %v62_v62 }
  0x2d   :  { %409 = vmatpush.msrb.mxu1 %v378_v35  ;;  %v68_v35 = vld [vmem:[%s2027_s0 + $0xf0] sm:$0xff] }
  0x2f   :  { %410 = vmatpush.msrb.mxu1 %v377_v37 }
  0x31   :  { %1142 = vmatmul.msk.f32.gmra.mxu0 %vm88_vm1, %v42_v17  ;;  %411 = vmatpush.msrb.mxu1 %v376_v44 }
  0x32   :  { %1153 = vmatmul.msk.f32.gmra.mxu1 %vm88_vm1, %v53_v26  ;;  %v572_v26 = vld [vmem:[%s2030_s5 + $0x38] sm:$0xff] }
  0x33   :  { %1163 = vmatmul.msk.f32.gmra.mxu2 %vm88_vm1, %v63_v4 }
  0x34   :  { %593 = vmatpush.msrb.mxu2 %v572_v26 }
  0x36   :  { %594 = vmatpush.msrb.mxu2 %v571_v27 }
  0x39   :  { %1143 = vmatmul.msk.f32.gmra.mxu0 %vm88_vm1, %v43_v21 }
  0x3a   :  { %1154 = vmatmul.msk.f32.gmra.mxu1 %vm88_vm1, %v54_v32  ;;  %v570_v32 = vld [vmem:[%s2030_s5 + $0x28] sm:$0xff] }
  0x3b   :  { %1164 = vmatmul.msk.f32.gmra.mxu2 %vm88_vm1, %v64_v11 }
  0x3c   :  { %595 = vmatpush.msrb.mxu2 %v570_v32 }
  0x41   :  { %1144 = vmatmul.msk.f32.gmra.mxu0 %vm88_vm1, %v44_v24 }
  0x42   :  { %1155 = vmatmul.msk.f32.gmra.mxu1 %vm88_vm1, %v55_v38  ;;  %v569_v38 = vld [vmem:[%s2030_s5 + $0x20] sm:$0xff] }
  0x43   :  { %1165 = vmatmul.msk.f32.gmra.mxu2 %vm88_vm1, %v65_v16 }
  0x44   :  { %596 = vmatpush.msrb.mxu2 %v569_v38 }
  0x49   :  { %1145 = vmatmul.msk.f32.gmra.mxu0 %vm88_vm1, %v45_v30 }
  0x4a   :  { %1156 = vmatmul.msk.f32.gmra.mxu1 %vm88_vm1, %v56_v40  ;;  %v69_v40 = vld [vmem:[%s2027_s0 + $0xf8] sm:$0xff] }
  0x4b   :  { %1166 = vmatmul.msk.f32.gmra.mxu2 %vm88_vm1, %v66_v22  ;;  %1169 = vmatmul.msk.f32.vlgmr.msra.gmra.mxu3 %vm88_vm1, %v69_v40 }
  0x51   :  { %1146 = vmatmul.msk.f32.gmra.mxu0 %vm88_vm1, %v46_v36 }
  0x52   :  { %1157 = vmatmul.msk.f32.gmra.mxu1 %vm88_vm1, %v57_v42 }
  0x53   :  { %1167 = vmatmul.msk.f32.gmra.mxu2 %vm88_vm1, %v67_v29 }
  0x59   :  { %1147 = vmatmul.msk.f32.gmra.mxu0 %vm88_vm1, %v47_v39  ;;  %v568_v39 = vld [vmem:[%s2030_s5 + $0x18] sm:$0xff] }
  0x5a   :  { %1158 = vmatmul.msk.f32.gmra.mxu1 %vm88_vm1, %v58_v43  ;;  %597 = vmatpush.msrb.mxu2 %v568_v39 }
  0x5b   :  { %1168 = vmatmul.msk.f32.gmra.mxu2 %vm88_vm1, %v68_v35 }
  0x61   :  { %1148 = vmatmul.msk.f32.gmra.mxu0 %vm88_vm1, %v48_v41 }
  0x8e   :  { %v224_v46 = vpop.f32.mrf.mxu0 }
  0x8f   :  { %v225_v47 = vadd.f32 %v1440_v45, %v224_v46  ;;  %v1468_v0 = vpop.f32.mrf.mxu1  ;;  %v567_v46 = vld [vmem:[%s2030_s5 + $0x10] sm:$0xff] }
  0x90   :  { %598 = vmatpush.msrb.mxu2 %v567_v46  ;;  %v258_v48 = vadd.f32 %v1440_v45, %v1468_v0 }
  0x91   :  { %v338_v49 = vmax.f32 %v225_v47, 0.0  ;;  %v70_v47 = vld [vmem:[%s2027_s0 + $0x100] sm:$0xff] }
  0x92   :  { %1170 = vmatmul.msk.f32.gmra.mxu3 %vm88_vm1, %v70_v47  ;;  %v769_v47 = vld [vmem:[%s2032_s7 + $0x78] sm:$0xff] }
  0x93   :  { %412 = vmatmul.f32.vlgmr.msrb.gmra.mxu1 %v338_v49  ;;  %774 = vmatpush.msrb.mxu3 %v769_v47 }
  0x96   :  { %v227_v50 = vpop.f32.mrf.mxu0 }
  0x97   :  { %v228_v51 = vadd.f32 %v1440_v45, %v227_v50  ;;  %v1481_v8 = vpop.f32.mrf.mxu1  ;;  %v349_v50 = vmax.f32 %v258_v48, 0.0 }
  0x98   :  { %v261_v52 = vadd.f32 %v1440_v45, %v1481_v8 }
  0x99   :  { %v339_v53 = vmax.f32 %v228_v51, 0.0  ;;  %v566_v51 = vld [vmem:[%s2030_s5 + $0x8] sm:$0xff] }
  0x9a   :  { %599 = vmatpush.msrb.mxu2 %v566_v51 }
  0x9b   :  { %415 = vmatmul.f32.gmra.mxu1 %v339_v53  ;;  %v350_v53 = vmax.f32 %v261_v52, 0.0  ;;  %v768_v52 = vld [vmem:[%s2032_s7 + $0x70] sm:$0xff] }
  0x9c   :  { %600 = vmatpush.msrb.mxu2 %v565_v56  ;;  %775 = vmatpush.msrb.mxu3 %v768_v52 }
  0x9e   :  { %v230_v54 = vpop.f32.mrf.mxu0 }
  0x9f   :  { %v231_v55 = vadd.f32 %v1440_v45, %v230_v54  ;;  %v1498_v17 = vpop.f32.mrf.mxu1 }
  0xa1   :  { %v340_v57 = vmax.f32 %v231_v55, 0.0  ;;  %v71_v55 = vld [vmem:[%s2027_s0 + $0x108] sm:$0xff] }
  0xa2   :  { %1171 = vmatmul.msk.f32.gmra.mxu3 %vm88_vm1, %v71_v55  ;;  %v767_v55 = vld [vmem:[%s2032_s7 + $0x68] sm:$0xff] }
  0xa3   :  { %418 = vmatmul.f32.gmra.mxu1 %v340_v57  ;;  %v264_v57 = vadd.f32 %v1440_v45, %v1498_v17  ;;  %v287_v17 = vpop.f32.mrf.mxu2  ;;  %776 = vmatpush.msrb.mxu3 %v767_v55 }
  0xa5   :  { %v351_v58 = vmax.f32 %v264_v57, 0.0 }
  0xa6   :  { %v233_v59 = vpop.f32.mrf.mxu0 }
  0xa7   :  { %v234_v60 = vadd.f32 %v1440_v45, %v233_v59  ;;  %v266_v25 = vpop.f32.mrf.mxu1  ;;  %v72_v59 = vld [vmem:[%s2027_s0 + $0x110] sm:$0xff] }
  0xa8   :  { %v267_v61 = vadd.f32 %v1440_v45, %v266_v25 }
  0xa9   :  { %v341_v63 = vmax.f32 %v234_v60, 0.0 }
  0xaa   :  { %1172 = vmatmul.msk.f32.gmra.mxu3 %vm88_vm1, %v72_v59  ;;  %v352_v62 = vmax.f32 %v267_v61, 0.0 }
  0xab   :  { %421 = vmatmul.f32.gmra.mxu1 %v341_v63  ;;  %v73_v63 = vld [vmem:[%s2027_s0 + $0x118] sm:$0xff] }
  0xae   :  { %v236_v1 = vpop.f32.mrf.mxu0 }
  0xaf   :  { %v237_v2 = vadd.f32 %v1440_v45, %v236_v1  ;;  %v269_v33 = vpop.f32.mrf.mxu1 }
  0xb0   :  { %v270_v0 = vadd.f32 %v1440_v45, %v269_v33 }
  0xb1   :  { %v342_v5 = vmax.f32 %v237_v2, 0.0 }
  0xb2   :  { %1173 = vmatmul.msk.f32.gmra.mxu3 %vm88_vm1, %v73_v63  ;;  %v353_v2 = vmax.f32 %v270_v0, 0.0  ;;  %v765_v63 = vld [vmem:[%s2032_s7 + $0x58] sm:$0xff]  ;;  %v764_v0 = vld [vmem:[%s2032_s7 + $0x50] sm:$0xff] }
  0xb3   :  { %424 = vmatmul.f32.gmra.mxu1 %v342_v5  ;;  %v1583_v5 = vld [vmem:[%s2029_s4] ss:$0 sm:$0xff] }
  0xb6   :  { %v239_v7 = vpop.f32.mrf.mxu0 }
  0xb7   :  { %v240_v9 = vadd.f32 %v1440_v45, %v239_v7  ;;  %v272_v42 = vpop.f32.mrf.mxu1 }
  0xb8   :  { %v273_v4 = vadd.f32 %v1440_v45, %v272_v42 }
  0xb9   :  { %v343_v12 = vmax.f32 %v240_v9, 0.0  ;;  %v75_v9 = vld [vmem:[%s2027_s0 + $0x128] sm:$0xff] }
  0xba   :  { %1174 = vmatmul.msk.f32.gmra.mxu3 %vm88_vm1, %v74_v3  ;;  %v354_v7 = vmax.f32 %v273_v4, 0.0  ;;  %v763_v4 = vld [vmem:[%s2032_s7 + $0x48] sm:$0xff] }
  0xbb   :  { %427 = vmatmul.f32.gmra.mxu1 %v343_v12 }
  0xbe   :  { %v242_v13 = vpop.f32.mrf.mxu0 }
  0xbf   :  { %v243_v14 = vadd.f32 %v1440_v45, %v242_v13  ;;  %v275_v49 = vpop.f32.mrf.mxu1 }
  0xc0   :  { %v276_v11 = vadd.f32 %v1440_v45, %v275_v49 }
  0xc1   :  { %v344_v18 = vmax.f32 %v243_v14, 0.0 }
  0xc2   :  { %1175 = vmatmul.msk.f32.gmra.mxu3 %vm88_vm1, %v75_v9  ;;  %v355_v13 = vmax.f32 %v276_v11, 0.0  ;;  %v762_v9 = vld [vmem:[%s2032_s7 + $0x40] sm:$0xff] }
  0xc3   :  { %430 = vmatmul.f32.gmra.mxu1 %v344_v18 }
  0xc6   :  { %v245_v21 = vpop.f32.mrf.mxu0 }
  0xc7   :  { %v246_v23 = vadd.f32 %v1440_v45, %v245_v21  ;;  %v278_v54 = vpop.f32.mrf.mxu1 }
  0xc8   :  { %v279_v16 = vadd.f32 %v1440_v45, %v278_v54 }
  0xc9   :  { %v345_v24 = vmax.f32 %v246_v23, 0.0 }
  0xca   :  { %v356_v19 = vmax.f32 %v279_v16, 0.0 }
  0xcb   :  { %433 = vmatmul.f32.gmra.mxu1 %v345_v24  ;;  %v290_v24 = vpop.f32.mrf.mxu2 }
  0xcc   :  { %v291_v39 = vadd.f32 %v1440_v45, %v290_v24  ;;  %v758_v24 = vld [vmem:[%s2032_s7 + $0x20] sm:$0xff] }
  0xce   :  { %v248_v28 = vpop.f32.mrf.mxu0 }
  0xcf   :  { %v249_v30 = vadd.f32 %v1440_v45, %v248_v28  ;;  %v281_v60 = vpop.f32.mrf.mxu1 }
  0xd0   :  { %v282_v22 = vadd.f32 %v1440_v45, %v281_v60  ;;  %v766_v60 = vld [vmem:[%s2032_s7 + $0x60] sm:$0xff] }
  0xd1   :  { %v346_v31 = vmax.f32 %v249_v30, 0.0  ;;  %777 = vmatpush.msrb.mxu3 %v766_v60 }
  0xd2   :  { %v357_v25 = vmax.f32 %v282_v22, 0.0 }
  0xd3   :  { %436 = vmatmul.f32.gmra.mxu1 %v346_v31  ;;  %v293_v32 = vpop.f32.mrf.mxu2  ;;  %778 = vmatpush.msrb.mxu3 %v765_v63 }
  0xd4   :  { %v294_v46 = vadd.f32 %v1440_v45, %v293_v32  ;;  %v317_v32 = vpop.f32.mrf.mxu3 }
  0xd5   :  { %779 = vmatpush.msrb.mxu3 %v764_v0 }
  0xd6   :  { %v251_v34 = vpop.f32.mrf.mxu0  ;;  %v361_v49 = vmax.f32 %v294_v46, 0.0 }
  0xd7   :  { %v252_v36 = vadd.f32 %v1440_v45, %v251_v34  ;;  %v284_v1 = vpop.f32.mrf.mxu1  ;;  %v288_v34 = vadd.f32 %v1440_v45, %v287_v17  ;;  %780 = vmatpush.msrb.mxu3 %v763_v4  ;;  %v760_v17 = vld [vmem:[%s2032_s7 + $0x30] sm:$0xff] }
  0xd8   :  { %v285_v28 = vadd.f32 %v1440_v45, %v284_v1 }
  0xd9   :  { %v347_v37 = vmax.f32 %v252_v36, 0.0  ;;  %v359_v35 = vmax.f32 %v288_v34, 0.0  ;;  %781 = vmatpush.msrb.mxu3 %v762_v9  ;;  %v755_v34 = vld [vmem:[%s2032_s7 + $0x8] sm:$0xff] }
  0xda   :  { %v358_v30 = vmax.f32 %v285_v28, 0.0 }
  0xdb   :  { %439 = vmatmul.f32.gmra.mxu1 %v347_v37  ;;  %v296_v40 = vpop.f32.mrf.mxu2 }
  0xdc   :  { %v297_v54 = vadd.f32 %v1440_v45, %v296_v40 }
  0xde   :  { %v254_v41 = vpop.f32.mrf.mxu0  ;;  %v362_v56 = vmax.f32 %v297_v54, 0.0 }
  0xdf   :  { %v255_v43 = vadd.f32 %v1440_v45, %v254_v41  ;;  %v360_v41 = vmax.f32 %v291_v39, 0.0 }
  0xe1   :  { %v348_v44 = vmax.f32 %v255_v43, 0.0 }
  0xe3   :  { %442 = vmatmul.f32.gmra.mxu1 %v348_v44  ;;  %v299_v48 = vpop.f32.mrf.mxu2 }
  0xeb   :  { %445 = vmatmul.f32.gmra.mxu1 %v349_v50 }
  0xf3   :  { %448 = vmatmul.f32.gmra.mxu1 %v350_v53 }
  0xfb   :  { %451 = vmatmul.f32.gmra.mxu1 %v351_v58  ;;  %v302_v58 = vpop.f32.mrf.mxu2 }
 0x103   :  { %454 = vmatmul.f32.gmra.mxu1 %v352_v62  ;;  %v300_v62 = vadd.f32 %v1440_v45, %v299_v48  ;;  %v318_v48 = vadd.f32 %v1440_v45, %v317_v32 }
 0x105   :  { %v363_v1 = vmax.f32 %v300_v62, 0.0 }
 0x10b   :  { %457 = vmatmul.f32.gmra.mxu1 %v353_v2 }
 0x110   :  { %v413_v6 = vpop.f32.mrf.mxu1 }
 0x111   :  { %v414_v8 = vadd.f32 %v1583_v5, %v413_v6  ;;  %v305_v6 = vpop.f32.mrf.mxu2 }
 0x113   :  { %v527_v10 = vmax.f32 %v414_v8, 0.0  ;;  %460 = vmatmul.f32.gmra.mxu1 %v354_v7  ;;  %v303_v8 = vadd.f32 %v1440_v45, %v302_v58 }
 0x115   :  { %601 = vmatmul.f32.vlgmr.msrb.gmra.mxu2 %v527_v10  ;;  %v364_v10 = vmax.f32 %v303_v8, 0.0 }
 0x118   :  { %v416_v12 = vpop.f32.mrf.mxu1 }
 0x119   :  { %v417_v14 = vadd.f32 %v1583_v5, %v416_v12  ;;  %v308_v16 = vpop.f32.mrf.mxu2 }
 0x11a   :  { %v309_v22 = vadd.f32 %v1440_v45, %v308_v16 }
 0x11b   :  { %463 = vmatmul.f32.gmra.mxu1 %v355_v13  ;;  %v528_v15 = vmax.f32 %v417_v14, 0.0  ;;  %v306_v14 = vadd.f32 %v1440_v45, %v305_v6 }
 0x11d   :  { %604 = vmatmul.f32.gmra.mxu2 %v528_v15  ;;  %v761_v15 = vld [vmem:[%s2032_s7 + $0x38] sm:$0xff] }
 0x11e   :  { %782 = vmatpush.msrb.mxu3 %v761_v15 }
 0x120   :  { %v419_v18 = vpop.f32.mrf.mxu1  ;;  %783 = vmatpush.msrb.mxu3 %v760_v17 }
 0x121   :  { %v420_v20 = vadd.f32 %v1583_v5, %v419_v18  ;;  %v365_v18 = vmax.f32 %v306_v14, 0.0 }
 0x123   :  { %466 = vmatmul.f32.gmra.mxu1 %v356_v19  ;;  %v529_v21 = vmax.f32 %v420_v20, 0.0 }
 0x125   :  { %607 = vmatmul.f32.gmra.mxu2 %v529_v21 }
 0x128   :  { %v422_v23 = vpop.f32.mrf.mxu1 }
 0x129   :  { %v423_v26 = vadd.f32 %v1583_v5, %v422_v23  ;;  %v759_v23 = vld [vmem:[%s2032_s7 + $0x28] sm:$0xff] }
 0x12a   :  { %784 = vmatpush.msrb.mxu3 %v759_v23 }
 0x12b   :  { %469 = vmatmul.f32.gmra.mxu1 %v357_v25  ;;  %v530_v27 = vmax.f32 %v423_v26, 0.0  ;;  %v757_v25 = vld [vmem:[%s2032_s7 + $0x18] sm:$0xff]  ;;  %v311_v26 = vpop.f32.mrf.mxu2 }
 0x12c   :  { %785 = vmatpush.msrb.mxu3 %v758_v24 }
 0x12d   :  { %610 = vmatmul.f32.gmra.mxu2 %v530_v27  ;;  %v366_v27 = vmax.f32 %v309_v22, 0.0 }
 0x12e   :  { %786 = vmatpush.msrb.mxu3 %v757_v25 }
 0x130   :  { %v425_v29 = vpop.f32.mrf.mxu1 }
 0x131   :  { %v426_v31 = vadd.f32 %v1583_v5, %v425_v29 }
 0x133   :  { %472 = vmatmul.f32.gmra.mxu1 %v358_v30  ;;  %v531_v33 = vmax.f32 %v426_v31, 0.0  ;;  %v312_v31 = vadd.f32 %v1440_v45, %v311_v26 }
 0x135   :  { %613 = vmatmul.f32.gmra.mxu2 %v531_v33  ;;  %v756_v33 = vld [vmem:[%s2032_s7 + $0x10] sm:$0xff] }
 0x136   :  { %787 = vmatpush.msrb.mxu3 %v756_v33 }
 0x138   :  { %v428_v36 = vpop.f32.mrf.mxu1  ;;  %788 = vmatpush.msrb.mxu3 %v755_v34 }
 0x139   :  { %v429_v37 = vadd.f32 %v1583_v5, %v428_v36 }
 0x13b   :  { %475 = vmatmul.f32.gmra.mxu1 %v359_v35  ;;  %v532_v38 = vmax.f32 %v429_v37, 0.0  ;;  %v367_v35 = vmax.f32 %v312_v31, 0.0  ;;  %v314_v37 = vpop.f32.mrf.mxu2 }
 0x13c   :  { %v315_v40 = vadd.f32 %v1440_v45, %v314_v37 }
 0x13d   :  { %616 = vmatmul.f32.gmra.mxu2 %v532_v38 }
 0x140   :  { %v431_v42 = vpop.f32.mrf.mxu1 }
 0x141   :  { %v432_v43 = vadd.f32 %v1583_v5, %v431_v42  ;;  %v320_v42 = vpop.f32.mrf.mxu3 }
 0x142   :  { %v321_v54 = vadd.f32 %v1440_v45, %v320_v42 }
 0x143   :  { %478 = vmatmul.f32.gmra.mxu1 %v360_v41  ;;  %v533_v44 = vmax.f32 %v432_v43, 0.0  ;;  %v754_v41 = vld [vmem:[%s2032_s7] sm:$0xff]  ;;  %v368_v43 = vmax.f32 %v315_v40, 0.0 }
 0x144   :  { %789 = vmatpush.msrb.mxu3 %v754_v41  ;;  %v370_v55 = vmax.f32 %v321_v54, 0.0  ;;  %v958_v41 = vld [vmem:[%s2034_s9 + $0x78] sm:$0xff] }
 0x145   :  { %619 = vmatmul.f32.gmra.mxu2 %v533_v44  ;;  %963 = vmatpush.msrb.mxu0 %v958_v41 }
 0x146   :  { %1200 = vmatpush.msra.mxu3 %v958_v41 }
 0x148   :  { %v434_v50 = vpop.f32.mrf.mxu1 }
 0x149   :  { %v435_v51 = vadd.f32 %v1583_v5, %v434_v50  ;;  %v323_v50 = vpop.f32.mrf.mxu3 }
 0x14a   :  { %v324_v60 = vadd.f32 %v1440_v45, %v323_v50 }
 0x14b   :  { %481 = vmatmul.f32.gmra.mxu1 %v361_v49  ;;  %v534_v53 = vmax.f32 %v435_v51, 0.0  ;;  %v369_v49 = vmax.f32 %v318_v48, 0.0  ;;  %v957_v48 = vld [vmem:[%s2034_s9 + $0x70] sm:$0xff] }
 0x14c   :  { %v371_v62 = vmax.f32 %v324_v60, 0.0  ;;  %964 = vmatpush.msrb.mxu0 %v957_v48  ;;  %1201 = vmatpush.msra.mxu3 %v957_v48  ;;  %v943_v48 = vld [vmem:[%s2034_s9] sm:$0xff] }
 0x14d   :  { %622 = vmatmul.f32.gmra.mxu2 %v534_v53 }
 0x150   :  { %v437_v57 = vpop.f32.mrf.mxu1 }
 0x151   :  { %v438_v59 = vadd.f32 %v1583_v5, %v437_v57  ;;  %v326_v58 = vpop.f32.mrf.mxu3 }
 0x152   :  { %v327_v6 = vadd.f32 %v1440_v45, %v326_v58 }
 0x153   :  { %484 = vmatmul.f32.gmra.mxu1 %v362_v56  ;;  %v535_v61 = vmax.f32 %v438_v59, 0.0 }
 0x154   :  { %v372_v8 = vmax.f32 %v327_v6, 0.0 }
 0x155   :  { %625 = vmatmul.f32.gmra.mxu2 %v535_v61  ;;  %v1674_v61 = vld [vmem:[%s2031_s6] ss:$0 sm:$0xff] }
 0x158   :  { %v440_v2 = vpop.f32.mrf.mxu1 }
 0x159   :  { %v441_v3 = vadd.f32 %v1583_v5, %v440_v2 }
 0x15b   :  { %487 = vmatmul.f32.gmra.mxu1 %v363_v1  ;;  %v536_v7 = vmax.f32 %v441_v3, 0.0 }
 0x15d   :  { %628 = vmatmul.f32.gmra.mxu2 %v536_v7  ;;  %v329_v7 = vpop.f32.mrf.mxu3 }
 0x15e   :  { %v330_v15 = vadd.f32 %v1440_v45, %v329_v7 }
 0x160   :  { %v443_v11 = vpop.f32.mrf.mxu1  ;;  %v373_v17 = vmax.f32 %v330_v15, 0.0 }
 0x161   :  { %v444_v12 = vadd.f32 %v1583_v5, %v443_v11 }
 0x163   :  { %490 = vmatmul.f32.gmra.mxu1 %v364_v10  ;;  %v537_v13 = vmax.f32 %v444_v12, 0.0 }
 0x165   :  { %631 = vmatmul.f32.gmra.mxu2 %v537_v13  ;;  %v332_v16 = vpop.f32.mrf.mxu3 }
 0x166   :  { %v333_v24 = vadd.f32 %v1440_v45, %v332_v16  ;;  %v951_v16 = vld [vmem:[%s2034_s9 + $0x40] sm:$0xff] }
 0x168   :  { %v446_v19 = vpop.f32.mrf.mxu1  ;;  %v374_v25 = vmax.f32 %v333_v24, 0.0  ;;  %v949_v24 = vld [vmem:[%s2034_s9 + $0x30] sm:$0xff] }
 0x169   :  { %v447_v20 = vadd.f32 %v1583_v5, %v446_v19 }
 0x16b   :  { %493 = vmatmul.f32.gmra.mxu1 %v365_v18  ;;  %v538_v21 = vmax.f32 %v447_v20, 0.0 }
 0x16d   :  { %634 = vmatmul.f32.gmra.mxu2 %v538_v21  ;;  %v335_v26 = vpop.f32.mrf.mxu3 }
 0x16e   :  { %v336_v33 = vadd.f32 %v1440_v45, %v335_v26 }
 0x170   :  { %v449_v28 = vpop.f32.mrf.mxu1  ;;  %v375_v34 = vmax.f32 %v336_v33, 0.0 }
 0x171   :  { %v450_v29 = vadd.f32 %v1583_v5, %v449_v28 }
 0x173   :  { %496 = vmatmul.f32.gmra.mxu1 %v366_v27  ;;  %v539_v30 = vmax.f32 %v450_v29, 0.0 }
 0x175   :  { %637 = vmatmul.f32.gmra.mxu2 %v539_v30 }
 0x178   :  { %v452_v36 = vpop.f32.mrf.mxu1 }
 0x179   :  { %v453_v38 = vadd.f32 %v1583_v5, %v452_v36 }
 0x17b   :  { %499 = vmatmul.f32.gmra.mxu1 %v367_v35  ;;  %v540_v39 = vmax.f32 %v453_v38, 0.0 }
 0x17d   :  { %640 = vmatmul.f32.gmra.mxu2 %v540_v39 }
 0x180   :  { %v455_v44 = vpop.f32.mrf.mxu1 }
 0x181   :  { %v456_v46 = vadd.f32 %v1583_v5, %v455_v44 }
 0x183   :  { %v541_v47 = vmax.f32 %v456_v46, 0.0  ;;  %502 = vmatmul.f32.gmra.mxu1 %v368_v43 }
 0x185   :  { %643 = vmatmul.f32.gmra.mxu2 %v541_v47 }
 0x188   :  { %v458_v51 = vpop.f32.mrf.mxu1 }
 0x189   :  { %v459_v52 = vadd.f32 %v1583_v5, %v458_v51 }
 0x18b   :  { %v542_v53 = vmax.f32 %v459_v52, 0.0  ;;  %505 = vmatmul.f32.gmra.mxu1 %v369_v49  ;;  %v956_v49 = vld [vmem:[%s2034_s9 + $0x68] sm:$0xff] }
 0x18c   :  { %965 = vmatpush.msrb.mxu0 %v956_v49  ;;  %1202 = vmatpush.msra.mxu3 %v956_v49 }
 0x18d   :  { %646 = vmatmul.f32.gmra.mxu2 %v542_v53 }
 0x190   :  { %v461_v56 = vpop.f32.mrf.mxu1 }
 0x191   :  { %v462_v57 = vadd.f32 %v1583_v5, %v461_v56  ;;  %v955_v56 = vld [vmem:[%s2034_s9 + $0x60] sm:$0xff] }
 0x192   :  { %966 = vmatpush.msrb.mxu0 %v955_v56  ;;  %1203 = vmatpush.msra.mxu3 %v955_v56 }
 0x193   :  { %v543_v59 = vmax.f32 %v462_v57, 0.0  ;;  %508 = vmatmul.f32.gmra.mxu1 %v370_v55 }
 0x195   :  { %649 = vmatmul.f32.gmra.mxu2 %v543_v59 }
 0x198   :  { %v464_v63 = vpop.f32.mrf.mxu1  ;;  %v602_v0 = vpop.f32.mrf.mxu2 }
 0x199   :  { %v465_v1 = vadd.f32 %v1583_v5, %v464_v63  ;;  %v603_v2 = vadd.f32 %v1674_v61, %v602_v0  ;;  %v954_v0 = vld [vmem:[%s2034_s9 + $0x58] sm:$0xff] }
 0x19a   :  { %967 = vmatpush.msrb.mxu0 %v954_v0  ;;  %1204 = vmatpush.msra.mxu3 %v954_v0 }
 0x19b   :  { %v544_v3 = vmax.f32 %v465_v1, 0.0  ;;  %v716_v4 = vmax.f32 %v603_v2, 0.0  ;;  %511 = vmatmul.f32.gmra.mxu1 %v371_v62  ;;  %v953_v1 = vld [vmem:[%s2034_s9 + $0x50] sm:$0xff] }
 0x19c   :  { %968 = vmatpush.msrb.mxu0 %v953_v1  ;;  %1205 = vmatpush.msra.mxu3 %v953_v1 }
 0x19d   :  { %652 = vmatmul.f32.gmra.mxu2 %v544_v3  ;;  %790 = vmatmul.f32.vlgmr.msrb.gmra.mxu3 %v716_v4 }
 0x1a0   :  { %v467_v9 = vpop.f32.mrf.mxu1  ;;  %v605_v10 = vpop.f32.mrf.mxu2 }
 0x1a1   :  { %v468_v11 = vadd.f32 %v1583_v5, %v467_v9  ;;  %v606_v12 = vadd.f32 %v1674_v61, %v605_v10  ;;  %v952_v9 = vld [vmem:[%s2034_s9 + $0x48] sm:$0xff] }
 0x1a2   :  { %969 = vmatpush.msrb.mxu0 %v952_v9  ;;  %1206 = vmatpush.msra.mxu3 %v952_v9 }
 0x1a3   :  { %v545_v13 = vmax.f32 %v468_v11, 0.0  ;;  %514 = vmatmul.f32.gmra.mxu1 %v372_v8  ;;  %v717_v14 = vmax.f32 %v606_v12, 0.0 }
 0x1a4   :  { %970 = vmatpush.msrb.mxu0 %v951_v16  ;;  %1207 = vmatpush.msra.mxu3 %v951_v16 }
 0x1a5   :  { %655 = vmatmul.f32.gmra.mxu2 %v545_v13  ;;  %793 = vmatmul.f32.gmra.mxu3 %v717_v14 }
 0x1a8   :  { %v470_v18 = vpop.f32.mrf.mxu1  ;;  %v608_v19 = vpop.f32.mrf.mxu2 }
 0x1a9   :  { %v471_v20 = vadd.f32 %v1583_v5, %v470_v18  ;;  %v609_v21 = vadd.f32 %v1674_v61, %v608_v19 }
 0x1ab   :  { %v546_v22 = vmax.f32 %v471_v20, 0.0  ;;  %517 = vmatmul.f32.gmra.mxu1 %v373_v17  ;;  %v718_v23 = vmax.f32 %v609_v21, 0.0  ;;  %v950_v17 = vld [vmem:[%s2034_s9 + $0x38] sm:$0xff] }
 0x1ac   :  { %971 = vmatpush.msrb.mxu0 %v950_v17  ;;  %1208 = vmatpush.msra.mxu3 %v950_v17 }
 0x1ad   :  { %658 = vmatmul.f32.gmra.mxu2 %v546_v22  ;;  %796 = vmatmul.f32.gmra.mxu3 %v718_v23 }
 0x1ae   :  { %972 = vmatpush.msrb.mxu0 %v949_v24  ;;  %1209 = vmatpush.msra.mxu3 %v949_v24 }
 0x1b0   :  { %v473_v27 = vpop.f32.mrf.mxu1  ;;  %v611_v28 = vpop.f32.mrf.mxu2 }
 0x1b1   :  { %v474_v29 = vadd.f32 %v1583_v5, %v473_v27  ;;  %v612_v30 = vadd.f32 %v1674_v61, %v611_v28 }
 0x1b3   :  { %v547_v31 = vmax.f32 %v474_v29, 0.0  ;;  %520 = vmatmul.f32.gmra.mxu1 %v374_v25  ;;  %v719_v32 = vmax.f32 %v612_v30, 0.0 }
 0x1b5   :  { %661 = vmatmul.f32.gmra.mxu2 %v547_v31  ;;  %799 = vmatmul.f32.gmra.mxu3 %v719_v32  ;;  %v948_v31 = vld [vmem:[%s2034_s9 + $0x28] sm:$0xff] }
 0x1b6   :  { %973 = vmatpush.msrb.mxu0 %v948_v31  ;;  %1210 = vmatpush.msra.mxu3 %v948_v31 }
 0x1b8   :  { %v476_v35 = vpop.f32.mrf.mxu1  ;;  %v614_v36 = vpop.f32.mrf.mxu2 }
 0x1b9   :  { %v477_v37 = vadd.f32 %v1583_v5, %v476_v35  ;;  %v615_v38 = vadd.f32 %v1674_v61, %v614_v36 }
 0x1bb   :  { %v548_v39 = vmax.f32 %v477_v37, 0.0  ;;  %523 = vmatmul.f32.gmra.mxu1 %v375_v34  ;;  %v720_v40 = vmax.f32 %v615_v38, 0.0  ;;  %v947_v38 = vld [vmem:[%s2034_s9 + $0x20] sm:$0xff] }
 0x1bc   :  { %974 = vmatpush.msrb.mxu0 %v947_v38  ;;  %1211 = vmatpush.msra.mxu3 %v947_v38 }
 0x1bd   :  { %664 = vmatmul.f32.gmra.mxu2 %v548_v39  ;;  %802 = vmatmul.f32.gmra.mxu3 %v720_v40  ;;  %v946_v39 = vld [vmem:[%s2034_s9 + $0x18] sm:$0xff] }
 0x1be   :  { %975 = vmatpush.msrb.mxu0 %v946_v39  ;;  %1212 = vmatpush.msra.mxu3 %v946_v39 }
 0x1c0   :  { %v479_v45 = vpop.f32.mrf.mxu1  ;;  %v617_v42 = vpop.f32.mrf.mxu2 }
 0x1c1   :  { %v480_v43 = vadd.f32 %v1583_v5, %v479_v45  ;;  %v618_v44 = vadd.f32 %v1674_v61, %v617_v42  ;;  %v945_v45 = vld [vmem:[%s2034_s9 + $0x10] sm:$0xff] }
 0x1c2   :  { %976 = vmatpush.msrb.mxu0 %v945_v45  ;;  %1213 = vmatpush.msra.mxu3 %v945_v45 }
 0x1c3   :  { %v549_v46 = vmax.f32 %v480_v43, 0.0  ;;  %v721_v47 = vmax.f32 %v618_v44, 0.0  ;;  %v944_v44 = vld [vmem:[%s2034_s9 + $0x8] sm:$0xff] }
 0x1c4   :  { %977 = vmatpush.msrb.mxu0 %v944_v44  ;;  %1214 = vmatpush.msra.mxu3 %v944_v44 }
 0x1c5   :  { %667 = vmatmul.f32.gmra.mxu2 %v549_v46  ;;  %805 = vmatmul.f32.gmra.mxu3 %v721_v47 }
 0x1c6   :  { %978 = vmatpush.msrb.mxu0 %v943_v48  ;;  %1215 = vmatpush.msra.mxu3 %v943_v48 }
 0x1c8   :  { %v482_v50 = vpop.f32.mrf.mxu1  ;;  %v620_v51 = vpop.f32.mrf.mxu2 }
 0x1c9   :  { %v483_v52 = vadd.f32 %v1583_v5, %v482_v50  ;;  %v621_v53 = vadd.f32 %v1674_v61, %v620_v51 }
 0x1cb   :  { %v550_v54 = vmax.f32 %v483_v52, 0.0  ;;  %v722_v55 = vmax.f32 %v621_v53, 0.0 }
 0x1cd   :  { %670 = vmatmul.f32.gmra.mxu2 %v550_v54  ;;  %808 = vmatmul.f32.gmra.mxu3 %v722_v55 }
 0x1d0   :  { %v485_v57 = vpop.f32.mrf.mxu1  ;;  %v623_v58 = vpop.f32.mrf.mxu2 }
 0x1d1   :  { %v486_v59 = vadd.f32 %v1583_v5, %v485_v57  ;;  %v624_v60 = vadd.f32 %v1674_v61, %v623_v58 }
 0x1d3   :  { %v551_v62 = vmax.f32 %v486_v59, 0.0  ;;  %v723_v63 = vmax.f32 %v624_v60, 0.0 }
 0x1d5   :  { %673 = vmatmul.f32.gmra.mxu2 %v551_v62  ;;  %811 = vmatmul.f32.gmra.mxu3 %v723_v63 }
 0x1d8   :  { %v488_v2 = vpop.f32.mrf.mxu1  ;;  %v626_v3 = vpop.f32.mrf.mxu2 }
 0x1d9   :  { %v489_v4 = vadd.f32 %v1583_v5, %v488_v2  ;;  %v627_v6 = vadd.f32 %v1674_v61, %v626_v3 }
 0x1db   :  { %v552_v7 = vmax.f32 %v489_v4, 0.0  ;;  %v724_v8 = vmax.f32 %v627_v6, 0.0  ;;  %v1765_v4 = vld [vmem:[%s2033_s8] ss:$0 sm:$0xff] }
 0x1dd   :  { %676 = vmatmul.f32.gmra.mxu2 %v552_v7  ;;  %814 = vmatmul.f32.gmra.mxu3 %v724_v8 }
 0x1e0   :  { %v491_v10 = vpop.f32.mrf.mxu1  ;;  %v629_v11 = vpop.f32.mrf.mxu2 }
 0x1e1   :  { %v492_v12 = vadd.f32 %v1583_v5, %v491_v10  ;;  %v630_v13 = vadd.f32 %v1674_v61, %v629_v11 }
 0x1e3   :  { %v553_v14 = vmax.f32 %v492_v12, 0.0  ;;  %v725_v15 = vmax.f32 %v630_v13, 0.0 }
 0x1e5   :  { %679 = vmatmul.f32.gmra.mxu2 %v553_v14  ;;  %817 = vmatmul.f32.gmra.mxu3 %v725_v15 }
 0x1e8   :  { %v494_v18 = vpop.f32.mrf.mxu1  ;;  %v632_v19 = vpop.f32.mrf.mxu2 }
 0x1e9   :  { %v495_v20 = vadd.f32 %v1583_v5, %v494_v18  ;;  %v633_v21 = vadd.f32 %v1674_v61, %v632_v19 }
 0x1eb   :  { %v554_v22 = vmax.f32 %v495_v20, 0.0  ;;  %v726_v23 = vmax.f32 %v633_v21, 0.0 }
 0x1ed   :  { %682 = vmatmul.f32.gmra.mxu2 %v554_v22  ;;  %820 = vmatmul.f32.gmra.mxu3 %v726_v23 }
 0x1f0   :  { %v497_v25 = vpop.f32.mrf.mxu1  ;;  %v635_v26 = vpop.f32.mrf.mxu2 }
 0x1f1   :  { %v498_v27 = vadd.f32 %v1583_v5, %v497_v25  ;;  %v636_v28 = vadd.f32 %v1674_v61, %v635_v26 }
 0x1f3   :  { %v555_v29 = vmax.f32 %v498_v27, 0.0  ;;  %v727_v30 = vmax.f32 %v636_v28, 0.0 }
 0x1f5   :  { %685 = vmatmul.f32.gmra.mxu2 %v555_v29  ;;  %823 = vmatmul.f32.gmra.mxu3 %v727_v30 }
 0x1f8   :  { %v500_v32 = vpop.f32.mrf.mxu1  ;;  %v638_v33 = vpop.f32.mrf.mxu2 }
 0x1f9   :  { %v501_v34 = vadd.f32 %v1583_v5, %v500_v32  ;;  %v639_v35 = vadd.f32 %v1674_v61, %v638_v33 }
 0x1fb   :  { %v556_v36 = vmax.f32 %v501_v34, 0.0  ;;  %v728_v37 = vmax.f32 %v639_v35, 0.0 }
 0x1fd   :  { %688 = vmatmul.f32.gmra.mxu2 %v556_v36  ;;  %826 = vmatmul.f32.gmra.mxu3 %v728_v37 }
 0x200   :  { %v503_v40 = vpop.f32.mrf.mxu1  ;;  %v641_v41 = vpop.f32.mrf.mxu2 }
 0x201   :  { %v504_v42 = vadd.f32 %v1583_v5, %v503_v40  ;;  %v642_v43 = vadd.f32 %v1674_v61, %v641_v41 }
 0x203   :  { %v557_v46 = vmax.f32 %v504_v42, 0.0  ;;  %v729_v47 = vmax.f32 %v642_v43, 0.0 }
 0x205   :  { %691 = vmatmul.f32.gmra.mxu2 %v557_v46  ;;  %829 = vmatmul.f32.gmra.mxu3 %v729_v47 }
 0x208   :  { %v506_v49 = vpop.f32.mrf.mxu1  ;;  %v644_v50 = vpop.f32.mrf.mxu2 }
 0x209   :  { %v507_v51 = vadd.f32 %v1583_v5, %v506_v49  ;;  %v645_v52 = vadd.f32 %v1674_v61, %v644_v50 }
 0x20b   :  { %v558_v53 = vmax.f32 %v507_v51, 0.0  ;;  %v730_v54 = vmax.f32 %v645_v52, 0.0 }
 0x20d   :  { %694 = vmatmul.f32.gmra.mxu2 %v558_v53  ;;  %832 = vmatmul.f32.gmra.mxu3 %v730_v54 }
 0x210   :  { %v509_v55 = vpop.f32.mrf.mxu1  ;;  %v647_v56 = vpop.f32.mrf.mxu2 }
 0x211   :  { %v510_v57 = vadd.f32 %v1583_v5, %v509_v55  ;;  %v648_v58 = vadd.f32 %v1674_v61, %v647_v56 }
 0x213   :  { %v559_v59 = vmax.f32 %v510_v57, 0.0  ;;  %v731_v60 = vmax.f32 %v648_v58, 0.0 }
 0x215   :  { %697 = vmatmul.f32.gmra.mxu2 %v559_v59  ;;  %835 = vmatmul.f32.gmra.mxu3 %v731_v60 }
 0x218   :  { %v512_v62 = vpop.f32.mrf.mxu1  ;;  %v650_v63 = vpop.f32.mrf.mxu2 }
 0x219   :  { %v513_v0 = vadd.f32 %v1583_v5, %v512_v62  ;;  %v651_v1 = vadd.f32 %v1674_v61, %v650_v63 }
 0x21b   :  { %v560_v2 = vmax.f32 %v513_v0, 0.0  ;;  %v732_v3 = vmax.f32 %v651_v1, 0.0 }
 0x21d   :  { %700 = vmatmul.f32.gmra.mxu2 %v560_v2  ;;  %838 = vmatmul.f32.gmra.mxu3 %v732_v3 }
 0x220   :  { %v515_v6 = vpop.f32.mrf.mxu1  ;;  %v653_v7 = vpop.f32.mrf.mxu2 }
 0x221   :  { %v516_v8 = vadd.f32 %v1583_v5, %v515_v6  ;;  %v654_v9 = vadd.f32 %v1674_v61, %v653_v7  ;;  %v791_v10 = vpop.f32.mrf.mxu3 }
 0x222   :  { %v792_v11 = vadd.f32 %v1765_v4, %v791_v10 }
 0x223   :  { %v561_v12 = vmax.f32 %v516_v8, 0.0  ;;  %v733_v13 = vmax.f32 %v654_v9, 0.0 }
 0x224   :  { %v905_v14 = vmax.f32 %v792_v11, 0.0 }
 0x225   :  { %703 = vmatmul.f32.gmra.mxu2 %v561_v12  ;;  %841 = vmatmul.f32.gmra.mxu3 %v733_v13 }
 0x226   :  { %979 = vmatmul.f32.vlgmr.msrb.gmra.mxu0 %v905_v14 }
 0x228   :  { %v518_v15 = vpop.f32.mrf.mxu1  ;;  %v656_v16 = vpop.f32.mrf.mxu2 }
 0x229   :  { %v519_v17 = vadd.f32 %v1583_v5, %v518_v15  ;;  %v657_v18 = vadd.f32 %v1674_v61, %v656_v16  ;;  %v794_v19 = vpop.f32.mrf.mxu3 }
 0x22a   :  { %v795_v20 = vadd.f32 %v1765_v4, %v794_v19 }
 0x22b   :  { %v562_v21 = vmax.f32 %v519_v17, 0.0  ;;  %v734_v22 = vmax.f32 %v657_v18, 0.0 }
 0x22c   :  { %v906_v23 = vmax.f32 %v795_v20, 0.0 }
 0x22d   :  { %706 = vmatmul.f32.gmra.mxu2 %v562_v21  ;;  %844 = vmatmul.f32.gmra.mxu3 %v734_v22 }
 0x22e   :  { %982 = vmatmul.f32.gmra.mxu0 %v906_v23 }
 0x230   :  { %v521_v24 = vpop.f32.mrf.mxu1  ;;  %v659_v25 = vpop.f32.mrf.mxu2 }
 0x231   :  { %v522_v26 = vadd.f32 %v1583_v5, %v521_v24  ;;  %v660_v27 = vadd.f32 %v1674_v61, %v659_v25  ;;  %v797_v28 = vpop.f32.mrf.mxu3 }
 0x232   :  { %v798_v29 = vadd.f32 %v1765_v4, %v797_v28 }
 0x233   :  { %v563_v30 = vmax.f32 %v522_v26, 0.0  ;;  %v735_v31 = vmax.f32 %v660_v27, 0.0 }
 0x234   :  { %v907_v32 = vmax.f32 %v798_v29, 0.0 }
 0x235   :  { %709 = vmatmul.f32.gmra.mxu2 %v563_v30  ;;  %847 = vmatmul.f32.gmra.mxu3 %v735_v31 }
 0x236   :  { %985 = vmatmul.f32.gmra.mxu0 %v907_v32 }
 0x238   :  { %v524_v33 = vpop.f32.mrf.mxu1  ;;  %v662_v34 = vpop.f32.mrf.mxu2 }
 0x239   :  { %v525_v35 = vadd.f32 %v1583_v5, %v524_v33  ;;  %v663_v36 = vadd.f32 %v1674_v61, %v662_v34  ;;  %v800_v37 = vpop.f32.mrf.mxu3 }
 0x23a   :  { %v801_v38 = vadd.f32 %v1765_v4, %v800_v37 }
 0x23b   :  { %v564_v39 = vmax.f32 %v525_v35, 0.0  ;;  %v736_v40 = vmax.f32 %v663_v36, 0.0 }
 0x23c   :  { %v908_v41 = vmax.f32 %v801_v38, 0.0 }
 0x23d   :  { %712 = vmatmul.f32.gmra.mxu2 %v564_v39  ;;  %850 = vmatmul.f32.gmra.mxu3 %v736_v40 }
 0x23e   :  { %988 = vmatmul.f32.gmra.mxu0 %v908_v41 }
 0x240   :  { %v665_v45 = vpop.f32.mrf.mxu2 }
 0x241   :  { %v666_v42 = vadd.f32 %v1674_v61, %v665_v45  ;;  %v803_v43 = vpop.f32.mrf.mxu3 }
 0x242   :  { %v804_v44 = vadd.f32 %v1765_v4, %v803_v43 }
 0x243   :  { %v737_v46 = vmax.f32 %v666_v42, 0.0 }
 0x244   :  { %v909_v47 = vmax.f32 %v804_v44, 0.0 }
 0x245   :  { %853 = vmatmul.f32.gmra.mxu3 %v737_v46 }
 0x246   :  { %991 = vmatmul.f32.gmra.mxu0 %v909_v47 }
 0x248   :  { %v668_v5 = vpop.f32.mrf.mxu2 }
 0x249   :  { %v669_v48 = vadd.f32 %v1674_v61, %v668_v5  ;;  %v806_v49 = vpop.f32.mrf.mxu3 }
 0x24a   :  { %v807_v50 = vadd.f32 %v1765_v4, %v806_v49 }
 0x24b   :  { %v738_v51 = vmax.f32 %v669_v48, 0.0 }
 0x24c   :  { %v910_v52 = vmax.f32 %v807_v50, 0.0 }
 0x24d   :  { %856 = vmatmul.f32.gmra.mxu3 %v738_v51 }
 0x24e   :  { %994 = vmatmul.f32.gmra.mxu0 %v910_v52  ;;  %v1806_v52 = vld [vmem:[%s2035_s10] ss:$0 sm:$0xff] }
 0x250   :  { %v671_v53 = vpop.f32.mrf.mxu2 }
 0x251   :  { %v672_v54 = vadd.f32 %v1674_v61, %v671_v53  ;;  %v809_v55 = vpop.f32.mrf.mxu3 }
 0x252   :  { %v810_v56 = vadd.f32 %v1765_v4, %v809_v55 }
 0x253   :  { %v739_v57 = vmax.f32 %v672_v54, 0.0 }
 0x254   :  { %v911_v58 = vmax.f32 %v810_v56, 0.0 }
 0x255   :  { %859 = vmatmul.f32.gmra.mxu3 %v739_v57 }
 0x256   :  { %997 = vmatmul.f32.gmra.mxu0 %v911_v58 }
 0x258   :  { %v674_v59 = vpop.f32.mrf.mxu2 }
 0x259   :  { %v675_v60 = vadd.f32 %v1674_v61, %v674_v59  ;;  %v812_v62 = vpop.f32.mrf.mxu3 }
 0x25a   :  { %v813_v63 = vadd.f32 %v1765_v4, %v812_v62 }
 0x25b   :  { %v740_v0 = vmax.f32 %v675_v60, 0.0 }
 0x25c   :  { %v912_v1 = vmax.f32 %v813_v63, 0.0 }
 0x25d   :  { %862 = vmatmul.f32.gmra.mxu3 %v740_v0 }
 0x25e   :  { %1000 = vmatmul.f32.gmra.mxu0 %v912_v1 }
 0x260   :  { %v677_v2 = vpop.f32.mrf.mxu2 }
 0x261   :  { %v678_v3 = vadd.f32 %v1674_v61, %v677_v2  ;;  %v815_v6 = vpop.f32.mrf.mxu3 }
 0x262   :  { %v816_v7 = vadd.f32 %v1765_v4, %v815_v6 }
 0x263   :  { %v741_v8 = vmax.f32 %v678_v3, 0.0 }
 0x264   :  { %v913_v9 = vmax.f32 %v816_v7, 0.0 }
 0x265   :  { %865 = vmatmul.f32.gmra.mxu3 %v741_v8 }
 0x266   :  { %1003 = vmatmul.f32.gmra.mxu0 %v913_v9 }
 0x268   :  { %v680_v10 = vpop.f32.mrf.mxu2 }
 0x269   :  { %v681_v11 = vadd.f32 %v1674_v61, %v680_v10  ;;  %v818_v12 = vpop.f32.mrf.mxu3 }
 0x26a   :  { %v819_v13 = vadd.f32 %v1765_v4, %v818_v12 }
 0x26b   :  { %v742_v14 = vmax.f32 %v681_v11, 0.0 }
 0x26c   :  { %v914_v15 = vmax.f32 %v819_v13, 0.0 }
 0x26d   :  { %868 = vmatmul.f32.gmra.mxu3 %v742_v14 }
 0x26e   :  { %1006 = vmatmul.f32.gmra.mxu0 %v914_v15 }
 0x270   :  { %v683_v16 = vpop.f32.mrf.mxu2 }
 0x271   :  { %v684_v17 = vadd.f32 %v1674_v61, %v683_v16  ;;  %v821_v18 = vpop.f32.mrf.mxu3 }
 0x272   :  { %v822_v19 = vadd.f32 %v1765_v4, %v821_v18 }
 0x273   :  { %v743_v20 = vmax.f32 %v684_v17, 0.0 }
 0x274   :  { %v915_v21 = vmax.f32 %v822_v19, 0.0 }
 0x275   :  { %871 = vmatmul.f32.gmra.mxu3 %v743_v20 }
 0x276   :  { %1009 = vmatmul.f32.gmra.mxu0 %v915_v21 }
 0x278   :  { %v686_v22 = vpop.f32.mrf.mxu2 }
 0x279   :  { %v687_v23 = vadd.f32 %v1674_v61, %v686_v22  ;;  %v824_v24 = vpop.f32.mrf.mxu3 }
 0x27a   :  { %v825_v25 = vadd.f32 %v1765_v4, %v824_v24 }
 0x27b   :  { %v744_v26 = vmax.f32 %v687_v23, 0.0 }
 0x27c   :  { %v916_v27 = vmax.f32 %v825_v25, 0.0 }
 0x27d   :  { %874 = vmatmul.f32.gmra.mxu3 %v744_v26 }
 0x27e   :  { %1012 = vmatmul.f32.gmra.mxu0 %v916_v27 }
 0x280   :  { %v689_v28 = vpop.f32.mrf.mxu2 }
 0x281   :  { %v690_v29 = vadd.f32 %v1674_v61, %v689_v28  ;;  %v827_v30 = vpop.f32.mrf.mxu3 }
 0x282   :  { %v828_v31 = vadd.f32 %v1765_v4, %v827_v30 }
 0x283   :  { %v745_v32 = vmax.f32 %v690_v29, 0.0 }
 0x284   :  { %v917_v33 = vmax.f32 %v828_v31, 0.0 }
 0x285   :  { %877 = vmatmul.f32.gmra.mxu3 %v745_v32 }
 0x286   :  { %1015 = vmatmul.f32.gmra.mxu0 %v917_v33 }
 0x288   :  { %v692_v34 = vpop.f32.mrf.mxu2 }
 0x289   :  { %v693_v35 = vadd.f32 %v1674_v61, %v692_v34  ;;  %v830_v36 = vpop.f32.mrf.mxu3 }
 0x28a   :  { %v831_v37 = vadd.f32 %v1765_v4, %v830_v36 }
 0x28b   :  { %v746_v38 = vmax.f32 %v693_v35, 0.0 }
 0x28c   :  { %v918_v39 = vmax.f32 %v831_v37, 0.0 }
 0x28d   :  { %880 = vmatmul.f32.gmra.mxu3 %v746_v38 }
 0x28e   :  { %1018 = vmatmul.f32.gmra.mxu0 %v918_v39 }
 0x290   :  { %v695_v40 = vpop.f32.mrf.mxu2 }
 0x291   :  { %v696_v41 = vadd.f32 %v1674_v61, %v695_v40  ;;  %v833_v45 = vpop.f32.mrf.mxu3 }
 0x292   :  { %v834_v42 = vadd.f32 %v1765_v4, %v833_v45 }
 0x293   :  { %v747_v43 = vmax.f32 %v696_v41, 0.0 }
 0x294   :  { %v919_v44 = vmax.f32 %v834_v42, 0.0 }
 0x295   :  { %883 = vmatmul.f32.gmra.mxu3 %v747_v43 }
 0x296   :  { %1021 = vmatmul.f32.gmra.mxu0 %v919_v44 }
 0x298   :  { %v698_v46 = vpop.f32.mrf.mxu2 }
 0x299   :  { %v699_v47 = vadd.f32 %v1674_v61, %v698_v46  ;;  %v836_v5 = vpop.f32.mrf.mxu3 }
 0x29a   :  { %v837_v48 = vadd.f32 %v1765_v4, %v836_v5 }
 0x29b   :  { %v748_v49 = vmax.f32 %v699_v47, 0.0 }
 0x29c   :  { %v920_v50 = vmax.f32 %v837_v48, 0.0 }
 0x29d   :  { %886 = vmatmul.f32.gmra.mxu3 %v748_v49 }
 0x29e   :  { %1024 = vmatmul.f32.gmra.mxu0 %v920_v50 }
 0x2a0   :  { %v701_v51 = vpop.f32.mrf.mxu2 }
 0x2a1   :  { %v702_v53 = vadd.f32 %v1674_v61, %v701_v51  ;;  %v839_v54 = vpop.f32.mrf.mxu3 }
 0x2a2   :  { %v840_v55 = vadd.f32 %v1765_v4, %v839_v54 }
 0x2a3   :  { %v749_v56 = vmax.f32 %v702_v53, 0.0  ;;  %v980_v57 = vpop.f32.mrf.mxu0 }
 0x2a4   :  { %v921_v58 = vmax.f32 %v840_v55, 0.0  ;;  %v981_v59 = vadd.f32 %v1806_v52, %v980_v57 }
 0x2a5   :  { %889 = vmatmul.f32.gmra.mxu3 %v749_v56 }
 0x2a6   :  { %1095 = vst.msk [vmem:[%s2036_s11] sm:$0xff] %vm1094_vm2, %v981_v59  ;;  %1027 = vmatmul.f32.gmra.mxu0 %v921_v58 }
 0x2a8   :  { %v704_v60 = vpop.f32.mrf.mxu2 }
 0x2a9   :  { %v705_v62 = vadd.f32 %v1674_v61, %v704_v60  ;;  %v842_v63 = vpop.f32.mrf.mxu3 }
 0x2aa   :  { %v843_v0 = vadd.f32 %v1765_v4, %v842_v63 }
 0x2ab   :  { %v750_v1 = vmax.f32 %v705_v62, 0.0  ;;  %v983_v2 = vpop.f32.mrf.mxu0 }
 0x2ac   :  { %v922_v3 = vmax.f32 %v843_v0, 0.0  ;;  %v984_v6 = vadd.f32 %v1806_v52, %v983_v2 }
 0x2ad   :  { %892 = vmatmul.f32.gmra.mxu3 %v750_v1 }
 0x2ae   :  { %1096 = vst.msk [vmem:[%s2036_s11 + $0x8] sm:$0xff] %vm1094_vm2, %v984_v6  ;;  %1030 = vmatmul.f32.gmra.mxu0 %v922_v3 }
 0x2b0   :  { %v707_v7 = vpop.f32.mrf.mxu2 }
 0x2b1   :  { %v708_v8 = vadd.f32 %v1674_v61, %v707_v7  ;;  %v845_v9 = vpop.f32.mrf.mxu3 }
 0x2b2   :  { %v846_v10 = vadd.f32 %v1765_v4, %v845_v9 }
 0x2b3   :  { %v751_v11 = vmax.f32 %v708_v8, 0.0  ;;  %v986_v12 = vpop.f32.mrf.mxu0 }
 0x2b4   :  { %v923_v13 = vmax.f32 %v846_v10, 0.0  ;;  %v987_v14 = vadd.f32 %v1806_v52, %v986_v12 }
 0x2b5   :  { %895 = vmatmul.f32.gmra.mxu3 %v751_v11 }
 0x2b6   :  { %1097 = vst.msk [vmem:[%s2036_s11 + $0x10] sm:$0xff] %vm1094_vm2, %v987_v14  ;;  %1033 = vmatmul.f32.gmra.mxu0 %v923_v13 }
 0x2b8   :  { %v710_v15 = vpop.f32.mrf.mxu2 }
 0x2b9   :  { %v711_v16 = vadd.f32 %v1674_v61, %v710_v15  ;;  %v848_v17 = vpop.f32.mrf.mxu3 }
 0x2ba   :  { %v849_v18 = vadd.f32 %v1765_v4, %v848_v17 }
 0x2bb   :  { %v752_v19 = vmax.f32 %v711_v16, 0.0  ;;  %v989_v20 = vpop.f32.mrf.mxu0 }
 0x2bc   :  { %v924_v21 = vmax.f32 %v849_v18, 0.0  ;;  %v990_v22 = vadd.f32 %v1806_v52, %v989_v20 }
 0x2bd   :  { %898 = vmatmul.f32.gmra.mxu3 %v752_v19 }
 0x2be   :  { %1098 = vst.msk [vmem:[%s2036_s11 + $0x18] sm:$0xff] %vm1094_vm2, %v990_v22  ;;  %1036 = vmatmul.f32.gmra.mxu0 %v924_v21 }
 0x2c0   :  { %v713_v23 = vpop.f32.mrf.mxu2 }
 0x2c1   :  { %v714_v24 = vadd.f32 %v1674_v61, %v713_v23  ;;  %v851_v25 = vpop.f32.mrf.mxu3 }
 0x2c2   :  { %v852_v26 = vadd.f32 %v1765_v4, %v851_v25 }
 0x2c3   :  { %v753_v27 = vmax.f32 %v714_v24, 0.0  ;;  %v992_v28 = vpop.f32.mrf.mxu0 }
 0x2c4   :  { %v925_v29 = vmax.f32 %v852_v26, 0.0  ;;  %v993_v30 = vadd.f32 %v1806_v52, %v992_v28 }
 0x2c5   :  { %901 = vmatmul.f32.gmra.mxu3 %v753_v27 }
 0x2c6   :  { %1099 = vst.msk [vmem:[%s2036_s11 + $0x20] sm:$0xff] %vm1094_vm2, %v993_v30  ;;  %1039 = vmatmul.f32.gmra.mxu0 %v925_v29 }
 0x2c9   :  { %v854_v31 = vpop.f32.mrf.mxu3 }
 0x2ca   :  { %v855_v32 = vadd.f32 %v1765_v4, %v854_v31 }
 0x2cb   :  { %v995_v33 = vpop.f32.mrf.mxu0 }
 0x2cc   :  { %v926_v61 = vmax.f32 %v855_v32, 0.0  ;;  %v996_v34 = vadd.f32 %v1806_v52, %v995_v33 }
 0x2ce   :  { %1100 = vst.msk [vmem:[%s2036_s11 + $0x28] sm:$0xff] %vm1094_vm2, %v996_v34  ;;  %1042 = vmatmul.f32.gmra.mxu0 %v926_v61 }
 0x2d1   :  { %v857_v35 = vpop.f32.mrf.mxu3 }
 0x2d2   :  { %v858_v36 = vadd.f32 %v1765_v4, %v857_v35 }
 0x2d3   :  { %v998_v37 = vpop.f32.mrf.mxu0 }
 0x2d4   :  { %v927_v38 = vmax.f32 %v858_v36, 0.0  ;;  %v999_v39 = vadd.f32 %v1806_v52, %v998_v37 }
 0x2d6   :  { %1101 = vst.msk [vmem:[%s2036_s11 + $0x30] sm:$0xff] %vm1094_vm2, %v999_v39  ;;  %1045 = vmatmul.f32.gmra.mxu0 %v927_v38 }
 0x2d9   :  { %v860_v40 = vpop.f32.mrf.mxu3 }
 0x2da   :  { %v861_v41 = vadd.f32 %v1765_v4, %v860_v40 }
 0x2db   :  { %v1001_v45 = vpop.f32.mrf.mxu0 }
 0x2dc   :  { %v928_v42 = vmax.f32 %v861_v41, 0.0  ;;  %v1002_v43 = vadd.f32 %v1806_v52, %v1001_v45 }
 0x2de   :  { %1102 = vst.msk [vmem:[%s2036_s11 + $0x38] sm:$0xff] %vm1094_vm2, %v1002_v43  ;;  %1048 = vmatmul.f32.gmra.mxu0 %v928_v42 }
 0x2e1   :  { %v863_v44 = vpop.f32.mrf.mxu3 }
 0x2e2   :  { %v864_v46 = vadd.f32 %v1765_v4, %v863_v44 }
 0x2e3   :  { %v1004_v47 = vpop.f32.mrf.mxu0 }
 0x2e4   :  { %v929_v5 = vmax.f32 %v864_v46, 0.0  ;;  %v1005_v48 = vadd.f32 %v1806_v52, %v1004_v47 }
 0x2e6   :  { %1103 = vst.msk [vmem:[%s2036_s11 + $0x40] sm:$0xff] %vm1094_vm2, %v1005_v48  ;;  %1051 = vmatmul.f32.gmra.mxu0 %v929_v5 }
 0x2e9   :  { %v866_v49 = vpop.f32.mrf.mxu3 }
 0x2ea   :  { %v867_v50 = vadd.f32 %v1765_v4, %v866_v49 }
 0x2eb   :  { %v1007_v51 = vpop.f32.mrf.mxu0 }
 0x2ec   :  { %v930_v53 = vmax.f32 %v867_v50, 0.0  ;;  %v1008_v54 = vadd.f32 %v1806_v52, %v1007_v51 }
 0x2ee   :  { %1104 = vst.msk [vmem:[%s2036_s11 + $0x48] sm:$0xff] %vm1094_vm2, %v1008_v54  ;;  %1054 = vmatmul.f32.gmra.mxu0 %v930_v53 }
 0x2f1   :  { %v869_v55 = vpop.f32.mrf.mxu3 }
 0x2f2   :  { %v870_v56 = vadd.f32 %v1765_v4, %v869_v55 }
 0x2f3   :  { %v1010_v57 = vpop.f32.mrf.mxu0 }
 0x2f4   :  { %v931_v58 = vmax.f32 %v870_v56, 0.0  ;;  %v1011_v59 = vadd.f32 %v1806_v52, %v1010_v57 }
 0x2f6   :  { %1105 = vst.msk [vmem:[%s2036_s11 + $0x50] sm:$0xff] %vm1094_vm2, %v1011_v59  ;;  %1057 = vmatmul.f32.gmra.mxu0 %v931_v58 }
 0x2f9   :  { %v872_v60 = vpop.f32.mrf.mxu3 }
 0x2fa   :  { %v873_v62 = vadd.f32 %v1765_v4, %v872_v60 }
 0x2fb   :  { %v1013_v63 = vpop.f32.mrf.mxu0 }
 0x2fc   :  { %v932_v0 = vmax.f32 %v873_v62, 0.0  ;;  %v1014_v1 = vadd.f32 %v1806_v52, %v1013_v63 }
 0x2fe   :  { %1106 = vst.msk [vmem:[%s2036_s11 + $0x58] sm:$0xff] %vm1094_vm2, %v1014_v1  ;;  %1060 = vmatmul.f32.gmra.mxu0 %v932_v0 }
 0x301   :  { %v875_v2 = vpop.f32.mrf.mxu3 }
 0x302   :  { %v876_v3 = vadd.f32 %v1765_v4, %v875_v2 }
 0x303   :  { %v1016_v6 = vpop.f32.mrf.mxu0 }
 0x304   :  { %v933_v7 = vmax.f32 %v876_v3, 0.0  ;;  %v1017_v8 = vadd.f32 %v1806_v52, %v1016_v6 }
 0x306   :  { %1107 = vst.msk [vmem:[%s2036_s11 + $0x60] sm:$0xff] %vm1094_vm2, %v1017_v8  ;;  %1063 = vmatmul.f32.gmra.mxu0 %v933_v7 }
 0x309   :  { %v878_v9 = vpop.f32.mrf.mxu3 }
 0x30a   :  { %v879_v10 = vadd.f32 %v1765_v4, %v878_v9 }
 0x30b   :  { %v1019_v11 = vpop.f32.mrf.mxu0 }
 0x30c   :  { %v934_v12 = vmax.f32 %v879_v10, 0.0  ;;  %v1020_v13 = vadd.f32 %v1806_v52, %v1019_v11 }
 0x30e   :  { %1108 = vst.msk [vmem:[%s2036_s11 + $0x68] sm:$0xff] %vm1094_vm2, %v1020_v13  ;;  %1066 = vmatmul.f32.gmra.mxu0 %v934_v12 }
 0x311   :  { %v881_v14 = vpop.f32.mrf.mxu3 }
 0x312   :  { %v882_v15 = vadd.f32 %v1765_v4, %v881_v14 }
 0x313   :  { %v1022_v16 = vpop.f32.mrf.mxu0 }
 0x314   :  { %v935_v17 = vmax.f32 %v882_v15, 0.0  ;;  %v1023_v18 = vadd.f32 %v1806_v52, %v1022_v16 }
 0x316   :  { %1109 = vst.msk [vmem:[%s2036_s11 + $0x70] sm:$0xff] %vm1094_vm2, %v1023_v18  ;;  %1069 = vmatmul.f32.gmra.mxu0 %v935_v17 }
 0x319   :  { %v884_v19 = vpop.f32.mrf.mxu3 }
 0x31a   :  { %v885_v20 = vadd.f32 %v1765_v4, %v884_v19 }
 0x31b   :  { %v1025_v21 = vpop.f32.mrf.mxu0 }
 0x31c   :  { %v936_v22 = vmax.f32 %v885_v20, 0.0  ;;  %v1026_v23 = vadd.f32 %v1806_v52, %v1025_v21 }
 0x31e   :  { %1110 = vst.msk [vmem:[%s2036_s11 + $0x78] sm:$0xff] %vm1094_vm2, %v1026_v23  ;;  %1072 = vmatmul.f32.gmra.mxu0 %v936_v22 }
 0x321   :  { %v887_v24 = vpop.f32.mrf.mxu3 }
 0x322   :  { %v888_v25 = vadd.f32 %v1765_v4, %v887_v24 }
 0x323   :  { %v1028_v26 = vpop.f32.mrf.mxu0 }
 0x324   :  { %v937_v27 = vmax.f32 %v888_v25, 0.0  ;;  %v1029_v28 = vadd.f32 %v1806_v52, %v1028_v26 }
 0x326   :  { %1111 = vst.msk [vmem:[%s2036_s11 + $0x80] sm:$0xff] %vm1094_vm2, %v1029_v28  ;;  %1075 = vmatmul.f32.gmra.mxu0 %v937_v27 }
 0x329   :  { %v890_v29 = vpop.f32.mrf.mxu3 }
 0x32a   :  { %v891_v30 = vadd.f32 %v1765_v4, %v890_v29 }
 0x32b   :  { %v1031_v31 = vpop.f32.mrf.mxu0 }
 0x32c   :  { %v938_v32 = vmax.f32 %v891_v30, 0.0  ;;  %v1032_v33 = vadd.f32 %v1806_v52, %v1031_v31 }
 0x32e   :  { %1112 = vst.msk [vmem:[%s2036_s11 + $0x88] sm:$0xff] %vm1094_vm2, %v1032_v33  ;;  %1078 = vmatmul.f32.gmra.mxu0 %v938_v32 }
 0x331   :  { %v893_v61 = vpop.f32.mrf.mxu3 }
 0x332   :  { %v894_v34 = vadd.f32 %v1765_v4, %v893_v61 }
 0x333   :  { %v1034_v35 = vpop.f32.mrf.mxu0 }
 0x334   :  { %v939_v36 = vmax.f32 %v894_v34, 0.0  ;;  %v1035_v37 = vadd.f32 %v1806_v52, %v1034_v35 }
 0x336   :  { %1113 = vst.msk [vmem:[%s2036_s11 + $0x90] sm:$0xff] %vm1094_vm2, %v1035_v37  ;;  %1081 = vmatmul.f32.gmra.mxu0 %v939_v36 }
 0x339   :  { %v896_v38 = vpop.f32.mrf.mxu3 }
 0x33a   :  { %v897_v39 = vadd.f32 %v1765_v4, %v896_v38 }
 0x33b   :  { %v1037_v40 = vpop.f32.mrf.mxu0 }
 0x33c   :  { %v940_v41 = vmax.f32 %v897_v39, 0.0  ;;  %v1038_v45 = vadd.f32 %v1806_v52, %v1037_v40 }
 0x33e   :  { %1114 = vst.msk [vmem:[%s2036_s11 + $0x98] sm:$0xff] %vm1094_vm2, %v1038_v45  ;;  %1084 = vmatmul.f32.gmra.mxu0 %v940_v41 }
 0x341   :  { %v899_v42 = vpop.f32.mrf.mxu3 }
 0x342   :  { %v900_v43 = vadd.f32 %v1765_v4, %v899_v42 }
 0x343   :  { %v1040_v44 = vpop.f32.mrf.mxu0 }
 0x344   :  { %v941_v46 = vmax.f32 %v900_v43, 0.0  ;;  %v1041_v47 = vadd.f32 %v1806_v52, %v1040_v44 }
 0x346   :  { %1115 = vst.msk [vmem:[%s2036_s11 + $0xa0] sm:$0xff] %vm1094_vm2, %v1041_v47  ;;  %1087 = vmatmul.f32.gmra.mxu0 %v941_v46 }
 0x349   :  { %v902_v5 = vpop.f32.mrf.mxu3 }
 0x34a   :  { %v903_v48 = vadd.f32 %v1765_v4, %v902_v5 }
 0x34b   :  { %v1043_v49 = vpop.f32.mrf.mxu0 }
 0x34c   :  { %v942_v50 = vmax.f32 %v903_v48, 0.0  ;;  %v1044_v51 = vadd.f32 %v1806_v52, %v1043_v49 }
 0x34e   :  { %1116 = vst.msk [vmem:[%s2036_s11 + $0xa8] sm:$0xff] %vm1094_vm2, %v1044_v51  ;;  %1090 = vmatmul.f32.vlgmr.msra.gmra.mxu3 %v942_v50 }
 0x353   :  { %v1046_v53 = vpop.f32.mrf.mxu0 }
 0x354   :  { %v1047_v54 = vadd.f32 %v1806_v52, %v1046_v53 }
 0x356   :  { %1117 = vst.msk [vmem:[%s2036_s11 + $0xb0] sm:$0xff] %vm1094_vm2, %v1047_v54 }
 0x35b   :  { %v1049_v55 = vpop.f32.mrf.mxu0 }
 0x35c   :  { %v1050_v4 = vadd.f32 %v1806_v52, %v1049_v55 }
 0x35e   :  { %1118 = vst.msk [vmem:[%s2036_s11 + $0xb8] sm:$0xff] %vm1094_vm2, %v1050_v4 }
 0x363   :  { %v1052_v56 = vpop.f32.mrf.mxu0 }
 0x364   :  { %v1053_v57 = vadd.f32 %v1806_v52, %v1052_v56 }
 0x366   :  { %1119 = vst.msk [vmem:[%s2036_s11 + $0xc0] sm:$0xff] %vm1094_vm2, %v1053_v57 }
 0x36b   :  { %v1055_v58 = vpop.f32.mrf.mxu0 }
 0x36c   :  { %v1056_v59 = vadd.f32 %v1806_v52, %v1055_v58 }
 0x36e   :  { %1120 = vst.msk [vmem:[%s2036_s11 + $0xc8] sm:$0xff] %vm1094_vm2, %v1056_v59 }
 0x373   :  { %v1058_v60 = vpop.f32.mrf.mxu0 }
 0x374   :  { %v1059_v62 = vadd.f32 %v1806_v52, %v1058_v60 }
 0x376   :  { %1121 = vst.msk [vmem:[%s2036_s11 + $0xd0] sm:$0xff] %vm1094_vm2, %v1059_v62 }
 0x37b   :  { %v1061_v63 = vpop.f32.mrf.mxu0 }
 0x37c   :  { %v1062_v0 = vadd.f32 %v1806_v52, %v1061_v63 }
 0x37e   :  { %1122 = vst.msk [vmem:[%s2036_s11 + $0xd8] sm:$0xff] %vm1094_vm2, %v1062_v0 }
 0x383   :  { %v1064_v1 = vpop.f32.mrf.mxu0 }
 0x384   :  { %v1065_v2 = vadd.f32 %v1806_v52, %v1064_v1 }
 0x386   :  { %1123 = vst.msk [vmem:[%s2036_s11 + $0xe0] sm:$0xff] %vm1094_vm2, %v1065_v2 }
 0x38b   :  { %v1067_v3 = vpop.f32.mrf.mxu0 }
 0x38c   :  { %v1068_v6 = vadd.f32 %v1806_v52, %v1067_v3 }
 0x38e   :  { %1124 = vst.msk [vmem:[%s2036_s11 + $0xe8] sm:$0xff] %vm1094_vm2, %v1068_v6 }
 0x393   :  { %v1070_v7 = vpop.f32.mrf.mxu0 }
 0x394   :  { %v1071_v8 = vadd.f32 %v1806_v52, %v1070_v7 }
 0x396   :  { %1125 = vst.msk [vmem:[%s2036_s11 + $0xf0] sm:$0xff] %vm1094_vm2, %v1071_v8 }
 0x39b   :  { %v1073_v9 = vpop.f32.mrf.mxu0 }
 0x39c   :  { %v1074_v10 = vadd.f32 %v1806_v52, %v1073_v9 }
 0x39e   :  { %1126 = vst.msk [vmem:[%s2036_s11 + $0xf8] sm:$0xff] %vm1094_vm2, %v1074_v10 }
 0x3a3   :  { %v1076_v11 = vpop.f32.mrf.mxu0 }
 0x3a4   :  { %v1077_v12 = vadd.f32 %v1806_v52, %v1076_v11 }
 0x3a6   :  { %1127 = vst.msk [vmem:[%s2036_s11 + $0x100] sm:$0xff] %vm1094_vm2, %v1077_v12 }
 0x3ab   :  { %v1079_v13 = vpop.f32.mrf.mxu0 }
 0x3ac   :  { %v1080_v14 = vadd.f32 %v1806_v52, %v1079_v13 }
 0x3ae   :  { %1128 = vst.msk [vmem:[%s2036_s11 + $0x108] sm:$0xff] %vm1094_vm2, %v1080_v14 }
 0x3b3   :  { %v1082_v15 = vpop.f32.mrf.mxu0 }
 0x3b4   :  { %v1083_v16 = vadd.f32 %v1806_v52, %v1082_v15 }
 0x3b6   :  { %1129 = vst.msk [vmem:[%s2036_s11 + $0x110] sm:$0xff] %vm1094_vm2, %v1083_v16 }
 0x3bb   :  { %v1085_v17 = vpop.f32.mrf.mxu0 }
 0x3bc   :  { %v1086_v18 = vadd.f32 %v1806_v52, %v1085_v17 }
 0x3be   :  { %1130 = vst.msk [vmem:[%s2036_s11 + $0x118] sm:$0xff] %vm1094_vm2, %v1086_v18 }
 0x3c3   :  { %v1088_v19 = vpop.f32.mrf.mxu0 }
 0x3c4   :  { %v1089_v20 = vadd.f32 %v1806_v52, %v1088_v19 }
 0x3c6   :  { %1131 = vst.msk [vmem:[%s2036_s11 + $0x120] sm:$0xff] %vm1094_vm2, %v1089_v20 }
 0x3d1   :  { %v1091_v21 = vpop.f32.mrf.mxu3 }
 0x3d2   :  { %v1092_v22 = vadd.f32 %v1806_v52, %v1091_v21 }
 0x3d4   :  { %1132 = vst.msk [vmem:[%s2036_s11 + $0x128] sm:$0xff] %vm1094_vm2, %v1092_v22 }

</bundles_post_ra>
